<compile_context>
chip_gen: v5e
topology: v5e:2x2
jax: 0.10.0
libtpu: 0.0.40
codegen_flags: <defaults>
</compile_context>

<pallas_src>
import jax
import jax.numpy as jnp
from jax.experimental import pallas as pl
from jax.experimental.pallas import tpu as pltpu

IN_FEATURES = 784
HIDDEN = 512
OUT_FEATURES = 10
OUT_PAD = 128  # lane-dense padded output width


def _mlp_kernel(x_ref, w1_ref, b1_ref, w2_ref, b2_ref, o_ref):
    # x tile: (TILE_B, 784); cast to bf16 for the MXU only if it didn't
    # already arrive as bf16 (static dtype check => no extra op on bf16 path).
    x = x_ref[...]
    if x.dtype != jnp.bfloat16:
        x = x.astype(jnp.bfloat16)
    h = jnp.dot(x, w1_ref[...], preferred_element_type=jnp.float32)
    h = jnp.tanh(h + b1_ref[...])                       # f32 bias-add + tanh (EUP)
    y = jnp.dot(h.astype(jnp.bfloat16), w2_ref[...],
                preferred_element_type=jnp.float32)
    y = y + b2_ref[...]
    # LeakyReLU(negative_slope=0.2)
    o_ref[...] = jnp.where(y > 0, y, 0.2 * y).astype(o_ref.dtype)


def prepare_params(w1, b1, w2, b2):
    """One-time layout/dtype prep from PyTorch nn.Linear layout.
    w1: (512, 784), b1: (512,), w2: (10, 512), b2: (10,).
    Returns (w1_t bf16 (784,512), b1 f32 (1,512),
             w2_t bf16 (512,128) zero-padded, b2 f32 (1,128) zero-padded)."""
    w1_t = jnp.asarray(w1.T, dtype=jnp.bfloat16)                   # (784, 512)
    b1_2d = jnp.asarray(b1, dtype=jnp.float32).reshape(1, HIDDEN)  # (1, 512)
    w2_t = jnp.zeros((HIDDEN, OUT_PAD), jnp.bfloat16)
    w2_t = w2_t.at[:, :OUT_FEATURES].set(jnp.asarray(w2.T, dtype=jnp.bfloat16))
    b2_2d = jnp.zeros((1, OUT_PAD), jnp.float32)
    b2_2d = b2_2d.at[0, :OUT_FEATURES].set(jnp.asarray(b2, dtype=jnp.float32))
    return w1_t, b1_2d, w2_t, b2_2d


def _pick_tile_b(B):
    """Large tiles to amortize per-step overhead; grid_b >= 2 once B >= 128
    so the batch axis can shard across TensorCores; round-to-8 single tile
    for small B."""
    if B >= 2048:
        return 1024
    if B >= 1024:
        return 512
    if B >= 512:
        return 256
    if B >= 128:
        return max(8, ((B + 15) // 16) * 8)   # ~B/2, multiple of 8 -> grid of 2
    return max(8, ((B + 7) // 8) * 8)          # single tile


def simple_nn_forward(x_nchw, w1_t, b1_2d, w2_t, b2_2d, *,
                      tile_b=None, out_dtype=jnp.bfloat16, return_padded=False):
    """x_nchw: (B, 1, 28, 28) in f32 or bf16 (bf16 preferred: halves the HBM
    read of the dominant activation stream).  Params from prepare_params().
    If return_padded=True, returns the lane-dense (B_pad, 128) slab (cols
    10..127 are exact zeros, rows >= B are garbage) to skip the slice pass."""
    B = x_nchw.shape[0]
    x_flat = x_nchw.reshape(B, -1)                       # == torch .view, no cast
    assert x_flat.shape[1] == IN_FEATURES

    if tile_b is None:
        tile_b = _pick_tile_b(B)
    grid_b = pl.cdiv(B, tile_b)
    b_pad = grid_b * tile_b
    if b_pad != B:
        x_flat = jnp.pad(x_flat, ((0, b_pad - B), (0, 0)))

    x_bytes = x_flat.size * x_flat.dtype.itemsize
    out_bytes = b_pad * OUT_PAD * jnp.dtype(out_dtype).itemsize
    cost = pl.CostEstimate(
        flops=2 * b_pad * (IN_FEATURES * HIDDEN + HIDDEN * OUT_PAD),
        transcendentals=b_pad * HIDDEN,
        bytes_accessed=(x_bytes + w1_t.size * 2 + w2_t.size * 2
                        + b1_2d.size * 4 + b2_2d.size * 4 + out_bytes),
    )

    out = pl.pallas_call(
        _mlp_kernel,
        out_shape=jax.ShapeDtypeStruct((b_pad, OUT_PAD), out_dtype),
        grid=(grid_b,),
        in_specs=[
            # Activations stream tile-by-tile along the batch grid.
            pl.BlockSpec((tile_b, IN_FEATURES), lambda i: (i, 0)),
            # Weights / biases: constant index_map => fetched once, VMEM-resident.
            pl.BlockSpec((IN_FEATURES, HIDDEN), lambda i: (0, 0)),
            pl.BlockSpec((1, HIDDEN), lambda i: (0, 0)),
            pl.BlockSpec((HIDDEN, OUT_PAD), lambda i: (0, 0)),
            pl.BlockSpec((1, OUT_PAD), lambda i: (0, 0)),
        ],
        out_specs=pl.BlockSpec((tile_b, OUT_PAD), lambda i: (i, 0)),
        compiler_params=pltpu.CompilerParams(
            dimension_semantics=(pltpu.PARALLEL,),   # batch axis is independent
        ),
        cost_estimate=cost,
    )(x_flat, w1_t, b1_2d, w2_t, b2_2d)

    if return_padded:
        return out
    return out[:B, :OUT_FEATURES]


def init_params(key):
    """Deterministic PyTorch-style init: U(-1/sqrt(fan_in), 1/sqrt(fan_in))."""
    k1, k2, k3, k4 = jax.random.split(key, 4)
    bound1 = 1.0 / jnp.sqrt(float(IN_FEATURES))
    bound2 = 1.0 / jnp.sqrt(float(HIDDEN))
    w1 = jax.random.uniform(k1, (HIDDEN, IN_FEATURES), jnp.float32, -bound1, bound1)
    b1 = jax.random.uniform(k2, (HIDDEN,), jnp.float32, -bound1, bound1)
    w2 = jax.random.uniform(k3, (OUT_FEATURES, HIDDEN), jnp.float32, -bound2, bound2)
    b2 = jax.random.uniform(k4, (OUT_FEATURES,), jnp.float32, -bound2, bound2)
    return w1, b1, w2, b2


if __name__ == "__main__":
    key = jax.random.PRNGKey(0)
    k_x, k_p = jax.random.split(key)

    B = 8
    x_f32 = jax.random.normal(k_x, (B, 1, 28, 28), jnp.float32)  # NCHW MNIST-sized
    w1, b1, w2, b2 = init_params(k_p)

    # One-time layout/dtype prep (pre-transpose + bf16 cast + output padding).
    w1_t, b1_2d, w2_t, b2_2d = prepare_params(w1, b1, w2, b2)

    # Optimized path: data arrives in HBM as bf16 (producer-side cast), so the
    # kernel's dominant activation read is half-width.
    x_bf16 = x_f32.astype(jnp.bfloat16)

    out = simple_nn_forward(x_bf16, w1_t, b1_2d, w2_t, b2_2d)
    out = jax.block_until_ready(out)

    # Pure-JAX f32 reference (PyTorch-equivalent math). bf16 input/matmuls/
    # output in the kernel => loosened tolerance.
    xr = x_f32.reshape(B, -1)
    ref = jnp.tanh(xr @ w1.T + b1) @ w2.T + b2
    ref = jnp.where(ref > 0, ref, 0.2 * ref)
    assert out.shape == (B, OUT_FEATURES)
    assert jnp.allclose(out.astype(jnp.float32), ref, atol=3e-2, rtol=3e-2), (
        float(jnp.max(jnp.abs(out.astype(jnp.float32) - ref))))

    print("KERNEL_OK")
</pallas_src>

<mosaic_0001>
module attributes {stable_mosaic.version = 11 : i64} {
  func.func @_mlp_kernel(%arg0: i32, %arg1: memref<8x784xbf16, #tpu.memory_space<vmem>>, %arg2: memref<784x512xbf16, #tpu.memory_space<vmem>>, %arg3: memref<1x512xf32, #tpu.memory_space<vmem>>, %arg4: memref<512x128xbf16, #tpu.memory_space<vmem>>, %arg5: memref<1x128xf32, #tpu.memory_space<vmem>>, %arg6: memref<8x128xbf16, #tpu.memory_space<vmem>>) attributes {dimension_semantics = [#tpu.dimension_semantics<parallel>], iteration_bounds = array<i64: 1>, scalar_prefetch = 0 : i64, scratch_operands = 0 : i64, tpu.core_type = #tpu.core_type<tc>, window_params = [{transform_indices = @transform_0, window_bounds = array<i64: 8, 784>}, {pipeline_mode = #tpu.pipeline_mode<synchronous>, transform_indices = @transform_1, window_bounds = array<i64: 784, 512>}, {pipeline_mode = #tpu.pipeline_mode<synchronous>, transform_indices = @transform_2, window_bounds = array<i64: 1, 512>}, {pipeline_mode = #tpu.pipeline_mode<synchronous>, transform_indices = @transform_3, window_bounds = array<i64: 512, 128>}, {pipeline_mode = #tpu.pipeline_mode<synchronous>, transform_indices = @transform_4, window_bounds = array<i64: 1, 128>}, {transform_indices = @transform_5, window_bounds = array<i64: 8, 128>}]} {
    %c0 = arith.constant 0 : index
    %c0_0 = arith.constant 0 : index
    %0 = vector.load %arg1[%c0, %c0_0] : memref<8x784xbf16, #tpu.memory_space<vmem>>, vector<8x784xbf16>
    %c0_1 = arith.constant 0 : index
    %c0_2 = arith.constant 0 : index
    %1 = vector.load %arg2[%c0_1, %c0_2] : memref<784x512xbf16, #tpu.memory_space<vmem>>, vector<784x512xbf16>
    %cst = arith.constant dense<0.000000e+00> : vector<8x512xf32>
    %2 = tpu.matmul %0, %1, %cst {dimension_numbers = #tpu.dot_dimension_numbers<[1], [0], [0], [1], [0, 0, 1, 1], [], []>} : vector<8x784xbf16>, vector<784x512xbf16>, vector<8x512xf32> -> vector<8x512xf32>
    %c0_3 = arith.constant 0 : index
    %c0_4 = arith.constant 0 : index
    %3 = vector.load %arg3[%c0_3, %c0_4] : memref<1x512xf32, #tpu.memory_space<vmem>>, vector<1x512xf32>
    %4 = vector.broadcast %3 : vector<1x512xf32> to vector<8x512xf32>
    %5 = arith.addf %2, %4 : vector<8x512xf32>
    %6 = math.tanh %5 : vector<8x512xf32>
    %7 = arith.truncf %6 : vector<8x512xf32> to vector<8x512xbf16>
    %c0_5 = arith.constant 0 : index
    %c0_6 = arith.constant 0 : index
    %8 = vector.load %arg4[%c0_5, %c0_6] : memref<512x128xbf16, #tpu.memory_space<vmem>>, vector<512x128xbf16>
    %cst_7 = arith.constant dense<0.000000e+00> : vector<8x128xf32>
    %9 = tpu.matmul %7, %8, %cst_7 {dimension_numbers = #tpu.dot_dimension_numbers<[1], [0], [0], [1], [0, 0, 1, 1], [], []>} : vector<8x512xbf16>, vector<512x128xbf16>, vector<8x128xf32> -> vector<8x128xf32>
    %c0_8 = arith.constant 0 : index
    %c0_9 = arith.constant 0 : index
    %10 = vector.load %arg5[%c0_8, %c0_9] : memref<1x128xf32, #tpu.memory_space<vmem>>, vector<1x128xf32>
    %11 = vector.broadcast %10 : vector<1x128xf32> to vector<8x128xf32>
    %12 = arith.addf %9, %11 : vector<8x128xf32>
    %cst_10 = arith.constant 0.000000e+00 : f32
    %13 = vector.broadcast %cst_10 : f32 to vector<8x128xf32>
    %14 = arith.cmpf ogt, %12, %13 : vector<8x128xf32>
    %cst_11 = arith.constant 2.000000e-01 : f32
    %15 = vector.broadcast %cst_11 : f32 to vector<8x128xf32>
    %16 = arith.mulf %15, %12 : vector<8x128xf32>
    %17 = arith.select %14, %12, %16 : vector<8x128xi1>, vector<8x128xf32>
    %18 = arith.truncf %17 : vector<8x128xf32> to vector<8x128xbf16>
    %c0_12 = arith.constant 0 : index
    %c0_13 = arith.constant 0 : index
    %19 = vector.load %arg6[%c0_12, %c0_13] : memref<8x128xbf16, #tpu.memory_space<vmem>>, vector<8x128xbf16>
    tpu.vector_store %arg6[%c0_12, %c0_13], %18 {strides = array<i32>} : memref<8x128xbf16, #tpu.memory_space<vmem>>, vector<8x128xbf16>,
    return
  }
  func.func @transform_0(%arg0: i32) -> (i32, i32) {
    %c0_i32 = arith.constant 0 : i32
    %c0_i32_0 = arith.constant 0 : i32
    return %arg0, %c0_i32 : i32, i32
  }
  func.func @transform_1(%arg0: i32) -> (i32, i32) {
    %c0_i32 = arith.constant 0 : i32
    %c0_i32_0 = arith.constant 0 : i32
    %c0_i32_1 = arith.constant 0 : i32
    return %c0_i32, %c0_i32_0 : i32, i32
  }
  func.func @transform_2(%arg0: i32) -> (i32, i32) {
    %c0_i32 = arith.constant 0 : i32
    %c0_i32_0 = arith.constant 0 : i32
    %c0_i32_1 = arith.constant 0 : i32
    return %c0_i32, %c0_i32_0 : i32, i32
  }
  func.func @transform_3(%arg0: i32) -> (i32, i32) {
    %c0_i32 = arith.constant 0 : i32
    %c0_i32_0 = arith.constant 0 : i32
    %c0_i32_1 = arith.constant 0 : i32
    return %c0_i32, %c0_i32_0 : i32, i32
  }
  func.func @transform_4(%arg0: i32) -> (i32, i32) {
    %c0_i32 = arith.constant 0 : i32
    %c0_i32_0 = arith.constant 0 : i32
    %c0_i32_1 = arith.constant 0 : i32
    return %c0_i32, %c0_i32_0 : i32, i32
  }
  func.func @transform_5(%arg0: i32) -> (i32, i32) {
    %c0_i32 = arith.constant 0 : i32
    %c0_i32_0 = arith.constant 0 : i32
    return %arg0, %c0_i32 : i32, i32
  }
}

</mosaic_0001>

<bundles_post_ra>
// kernel: tpu_custom_call.1
= control target key start
LH: loop header
LB: loop body
LE: loop exit
PB: predicated region body
PF: predicated region fallthrough
CT: control target
= control target key end

     0   :  { %10 = vsyncpa [#allocation3], 0  ;;  %s3418_s0 = inlined_call_operand.hbm [shape: bf16[8,784], index: 0, kind: input, shape index: {}]   ;;  %s3419_s1 = inlined_call_operand.hbm [shape: bf16[784,512], index: 1, kind: input, shape index: {}]   ;;  %s3420_s2 = inlined_call_operand.hbm [shape: f32[1,512], index: 2, kind: input, shape index: {}]   ;;  %s3421_s3 = inlined_call_operand.hbm [shape: bf16[512,128], index: 3, kind: input, shape index: {}]   ;;  %s3422_s4 = inlined_call_operand.vmem [shape: f32[1,128], index: 4, kind: input, shape index: {}]   ;;  %s3423_s5 = inlined_call_operand.hbm [shape: bf16[8,128], index: 5, kind: output, shape index: {}]  }
   0x1   :  { %11 = vsyncpa [#allocation6], 0 }
   0x2   :  { %12 = vsyncpa [#allocation9], 0  ;;  %s29_s20 = sshll.u32 %s3419_s1, 4  ;;  %s30_s20 = int_to_ptr.hbm [resolvable:$true] %s29_s20 }
   0x3   :  { %13 = vsyncpa [#allocation4], 0  ;;  %s3297_s21 = smov [#allocation5]   ;;  %s19_s25 = sshll.u32 %s3418_s0, 4  ;;  %s20_s25 = int_to_ptr.hbm [resolvable:$true] %s19_s25 }
   0x4   :  { %s31_s22 = sshll.u32 %s3297_s21, 4  ;;  %s3298_s26 = smov 256   ;;  %s32_s22 = int_to_ptr.vmem [resolvable:$true] %s31_s22 }
   0x5   :  { %s3299_s27 = smov 16   ;;  %s3300_s28 = smov [#allocation2]  }
   0x6   :  { %37 = dma.hbm_to_vmem [thread:$0]  %s30_s20, 25088, %s32_s22, [#allocation6], %s3298_s26, %s3298_s26, %s3299_s27  }
   0x7   :  { %s21_s29 = sshll.u32 %s3300_s28, 4  ;;  %s43_s7 = sshll.u32 %s3420_s2, 4  ;;  %s22_s29 = int_to_ptr.vmem [resolvable:$true] %s21_s29  ;;  %s44_s7 = int_to_ptr.hbm [resolvable:$true] %s43_s7 }
   0x8   :  { %24 = dma.hbm_to_vmem [thread:$0]  %s20_s25, 448, %s22_s29, [#allocation3]  }
   0x9   :  { %s53_s9 = sshll.u32 %s3421_s3, 4  ;;  %s3301_s10 = smov [#allocation7]   ;;  %s54_s9 = int_to_ptr.hbm [resolvable:$true] %s53_s9 }
   0xa   :  { %s45_s11 = sshll.u32 %s3301_s10, 4  ;;  %s3302_s0 = smov [#allocation8]   ;;  %s46_s11 = int_to_ptr.vmem [resolvable:$true] %s45_s11 }
   0xb   :  { %48 = dma.hbm_to_vmem [thread:$0]  %s44_s7, 64, %s46_s11, [#allocation6]  }
   0xc   :  { %s55_s12 = sshll.u32 %s3302_s0, 4  ;;  %s3303_s13 = smov 64   ;;  %s56_s12 = int_to_ptr.vmem [resolvable:$true] %s55_s12 }
   0xd   :  { %s3304_s14 = smov 4  }
   0xe   :  { %61 = dma.hbm_to_vmem [thread:$0]  %s54_s9, 4096, %s56_s12, [#allocation9], %s3303_s13, %s3303_s13, %s3304_s14  }
   0xf   :  { %3289 = dma.done.wait [#allocation3], 448  }
  0x10   :  { %3290 = vsyncadd [#allocation3], 4294966848 }
  0x11   :  { %3291 = dma.done.wait [#allocation6], 25152  }
  0x12   :  { %3292 = vsyncadd [#allocation6], 4294942144 }
  0x13   :  { %3293 = dma.done.wait [#allocation9], 4096  }
  0x14   :  { %3294 = vsyncadd [#allocation9], 4294963200  ;;  %v2121_v0 = vld [vmem:[#allocation5 + $0xe0] sm:$0xf]  ;;  %v2953_v1 = vld [vmem:[#allocation5 + $0xec] sm:$0xf0] }
  0x15   :  { %v2249_v2 = vld [vmem:[#allocation5 + $0x1e0] sm:$0xf]  ;;  %v2122_v3 = vor.u32 %v2953_v1, %v2121_v0  ;;  %v2985_v4 = vld [vmem:[#allocation5 + $0x1ec] sm:$0xf0]  ;;  %vm1295_vm0 = vcmask 130048   ;;  %s3305_s15 = smov [#allocation10]  }
  0x16   :  { %v2377_v5 = vld [vmem:[#allocation5 + $0x2e0] sm:$0xf]  ;;  %v3017_v6 = vld [vmem:[#allocation5 + $0x2ec] sm:$0xf0]  ;;  %v2250_v7 = vor.u32 %v2985_v4, %v2249_v2  ;;  %s1993_s16 = sshll.u32 %s3305_s15, 4  ;;  %s1995_s19 = sshll.u32 %s3423_s5, 4  ;;  %s1994_s16 = int_to_ptr.vmem [resolvable:$true] %s1993_s16  ;;  %s1996_s19 = int_to_ptr.hbm [resolvable:$true] %s1995_s19 }
  0x17   :  { %v2378_v8 = vor.u32 %v3017_v6, %v2377_v5  ;;  %v2505_v9 = vld [vmem:[#allocation5 + $0x3e0] sm:$0xf]  ;;  %v3049_v10 = vld [vmem:[#allocation5 + $0x3ec] sm:$0xf0]  ;;  %1299 = vmatpush.bf16.msra.mxu0 %v2122_v3 }
  0x18   :  { %v2105_v11 = vld [vmem:[#allocation5 + $0xc0] sm:$0xf]  ;;  %v2506_v12 = vor.u32 %v3049_v10, %v2505_v9  ;;  %v2949_v13 = vld [vmem:[#allocation5 + $0xcc] sm:$0xf0]  ;;  %1312 = vmatpush.bf16.msra.mxu1 %v2250_v7 }
  0x19   :  { %v2233_v14 = vld [vmem:[#allocation5 + $0x1c0] sm:$0xf]  ;;  %v2981_v15 = vld [vmem:[#allocation5 + $0x1cc] sm:$0xf0]  ;;  %1325 = vmatpush.bf16.msra.mxu2 %v2378_v8  ;;  %v2106_v16 = vor.u32 %v2949_v13, %v2105_v11 }
  0x1a   :  { %v2234_v17 = vor.u32 %v2981_v15, %v2233_v14  ;;  %v2361_v18 = vld [vmem:[#allocation5 + $0x2c0] sm:$0xf]  ;;  %v3013_v19 = vld [vmem:[#allocation5 + $0x2cc] sm:$0xf0]  ;;  %1338 = vmatpush.bf16.msra.mxu3 %v2506_v12 }
  0x1b   :  { %v2489_v20 = vld [vmem:[#allocation5 + $0x3c0] sm:$0xf]  ;;  %v2362_v21 = vor.u32 %v3013_v19, %v2361_v18  ;;  %v3045_v22 = vld [vmem:[#allocation5 + $0x3cc] sm:$0xf0]  ;;  %1300 = vmatpush.bf16.msra.mxu0 %v2106_v16 }
  0x1c   :  { %v2089_v23 = vld [vmem:[#allocation5 + $0xa0] sm:$0xf]  ;;  %v2945_v24 = vld [vmem:[#allocation5 + $0xac] sm:$0xf0]  ;;  %v2490_v25 = vor.u32 %v3045_v22, %v2489_v20  ;;  %1313 = vmatpush.bf16.msra.mxu1 %v2234_v17 }
  0x1d   :  { %v2217_v26 = vld [vmem:[#allocation5 + $0x1a0] sm:$0xf]  ;;  %v2977_v27 = vld [vmem:[#allocation5 + $0x1ac] sm:$0xf0]  ;;  %v2090_v29 = vor.u32 %v2945_v24, %v2089_v23  ;;  %1326 = vmatpush.bf16.msra.mxu2 %v2362_v21 }
  0x1e   :  { %v2345_v28 = vld [vmem:[#allocation5 + $0x2a0] sm:$0xf]  ;;  %v3009_v30 = vld [vmem:[#allocation5 + $0x2ac] sm:$0xf0]  ;;  %v2218_v33 = vor.u32 %v2977_v27, %v2217_v26  ;;  %1339 = vmatpush.bf16.msra.mxu3 %v2490_v25 }
  0x1f   :  { %v2473_v31 = vld [vmem:[#allocation5 + $0x3a0] sm:$0xf]  ;;  %v3041_v32 = vld [vmem:[#allocation5 + $0x3ac] sm:$0xf0]  ;;  %v2346_v34 = vor.u32 %v3009_v30, %v2345_v28  ;;  %1301 = vmatpush.bf16.msra.mxu0 %v2090_v29 }
  0x20   :  { %v2073_v35 = vld [vmem:[#allocation5 + $0x80] sm:$0xf]  ;;  %v2941_v36 = vld [vmem:[#allocation5 + $0x8c] sm:$0xf0]  ;;  %v2474_v38 = vor.u32 %v3041_v32, %v2473_v31  ;;  %1314 = vmatpush.bf16.msra.mxu1 %v2218_v33 }
  0x21   :  { %v2201_v37 = vld [vmem:[#allocation5 + $0x180] sm:$0xf]  ;;  %v2973_v39 = vld [vmem:[#allocation5 + $0x18c] sm:$0xf0]  ;;  %v2074_v44 = vor.u32 %v2941_v36, %v2073_v35  ;;  %1327 = vmatpush.bf16.msra.mxu2 %v2346_v34  ;;  %v2951_v34 = vld [vmem:[#allocation5 + $0xe4] sm:$0xf] }
  0x22   :  { %v2329_v40 = vld [vmem:[#allocation5 + $0x280] sm:$0xf]  ;;  %v3005_v41 = vld [vmem:[#allocation5 + $0x28c] sm:$0xf0]  ;;  %v2202_v45 = vor.u32 %v2973_v39, %v2201_v37  ;;  %1340 = vmatpush.bf16.msra.mxu3 %v2474_v38  ;;  %v2123_v35 = vld [vmem:[#allocation5 + $0xf0] sm:$0xf0] }
  0x23   :  { %v2457_v42 = vld [vmem:[#allocation5 + $0x380] sm:$0xf]  ;;  %v3037_v43 = vld [vmem:[#allocation5 + $0x38c] sm:$0xf0]  ;;  %v2330_v46 = vor.u32 %v3005_v41, %v2329_v40  ;;  %1302 = vmatpush.bf16.msra.mxu0 %v2074_v44  ;;  %v81_v37 = vld [vmem:[#allocation2] sm:$0xff] }
  0x24   :  { %v2057_v47 = vld [vmem:[#allocation5 + $0x60] sm:$0xf]  ;;  %v2937_v48 = vld [vmem:[#allocation5 + $0x6c] sm:$0xf0]  ;;  %v2458_v50 = vor.u32 %v3037_v43, %v2457_v42  ;;  %1315 = vmatpush.bf16.msra.mxu1 %v2202_v45  ;;  %v295_v41 = vunpack.c.l.b16 %v81_v37 }
  0x25   :  { %v2185_v49 = vld [vmem:[#allocation5 + $0x160] sm:$0xf]  ;;  %v2969_v51 = vld [vmem:[#allocation5 + $0x16c] sm:$0xf0]  ;;  %v2058_v56 = vor.u32 %v2937_v48, %v2057_v47  ;;  %1328 = vmatpush.bf16.msra.mxu2 %v2330_v46  ;;  %v2983_v46 = vld [vmem:[#allocation5 + $0x1e4] sm:$0xf] }
  0x26   :  { %v2313_v52 = vld [vmem:[#allocation5 + $0x260] sm:$0xf]  ;;  %v3001_v53 = vld [vmem:[#allocation5 + $0x26c] sm:$0xf0]  ;;  %v2186_v57 = vor.u32 %v2969_v51, %v2185_v49  ;;  %1341 = vmatpush.bf16.msra.mxu3 %v2458_v50  ;;  %v2251_v47 = vld [vmem:[#allocation5 + $0x1f0] sm:$0xf0]  ;;  %v2126_v49 = vor.u32 %v2951_v34, %v2123_v35 }
  0x27   :  { %v2441_v54 = vld [vmem:[#allocation5 + $0x360] sm:$0xf]  ;;  %v3033_v55 = vld [vmem:[#allocation5 + $0x36c] sm:$0xf0]  ;;  %v2314_v58 = vor.u32 %v3001_v53, %v2313_v52  ;;  %1303 = vmatpush.bf16.msra.mxu0 %v2058_v56  ;;  %v2107_v56 = vld [vmem:[#allocation5 + $0xd0] sm:$0xf0] }
  0x28   :  { %v2041_v59 = vld [vmem:[#allocation5 + $0x40] sm:$0xf]  ;;  %v2933_v60 = vld [vmem:[#allocation5 + $0x4c] sm:$0xf0]  ;;  %v2442_v62 = vor.u32 %v3033_v55, %v2441_v54  ;;  %1316 = vmatpush.bf16.msra.mxu1 %v2186_v57  ;;  %v2947_v55 = vld [vmem:[#allocation5 + $0xc4] sm:$0xf]  ;;  %v3350_v57 = vpack.c.b16 %v295_v41, %v295_v41 }
  0x29   :  { %v2169_v61 = vld [vmem:[#allocation5 + $0x140] sm:$0xf]  ;;  %v2965_v63 = vld [vmem:[#allocation5 + $0x14c] sm:$0xf0]  ;;  %v2042_v4 = vor.u32 %v2933_v60, %v2041_v59  ;;  %1329 = vmatpush.bf16.msra.mxu2 %v2314_v58  ;;  %v296_v58 = vunpack.c.h.b16 %v81_v37  ;;  %v2059_v34 = vld [vmem:[#allocation5 + $0x70] sm:$0xf0] }
  0x2a   :  { %v2297_v0 = vld [vmem:[#allocation5 + $0x240] sm:$0xf]  ;;  %v2997_v1 = vld [vmem:[#allocation5 + $0x24c] sm:$0xf0]  ;;  %v2170_v5 = vor.u32 %v2965_v63, %v2169_v61  ;;  %1342 = vmatpush.bf16.msra.mxu3 %v2442_v62  ;;  %v2254_v61 = vor.u32 %v2983_v46, %v2251_v47  ;;  %v2979_v63 = vld [vmem:[#allocation5 + $0x1c4] sm:$0xf] }
  0x2b   :  { %v2425_v2 = vld [vmem:[#allocation5 + $0x340] sm:$0xf]  ;;  %v3029_v3 = vld [vmem:[#allocation5 + $0x34c] sm:$0xf0]  ;;  %v2298_v6 = vor.u32 %v2997_v1, %v2297_v0  ;;  %1304 = vmatpush.bf16.msra.mxu0 %v2042_v4  ;;  %v2235_v0 = vld [vmem:[#allocation5 + $0x1d0] sm:$0xf0] }
  0x2c   :  { %v2025_v7 = vld [vmem:[#allocation5 + $0x20] sm:$0xf]  ;;  %v2929_v8 = vld [vmem:[#allocation5 + $0x2c] sm:$0xf0]  ;;  %v2426_v10 = vor.u32 %v3029_v3, %v2425_v2  ;;  %1317 = vmatpush.bf16.msra.mxu1 %v2170_v5  ;;  %v2110_v2 = vor.u32 %v2947_v55, %v2107_v56  ;;  %v2931_v46 = vld [vmem:[#allocation5 + $0x44] sm:$0xf] }
  0x2d   :  { %v2153_v9 = vld [vmem:[#allocation5 + $0x120] sm:$0xf]  ;;  %v2961_v11 = vld [vmem:[#allocation5 + $0x12c] sm:$0xf0]  ;;  %v2026_v17 = vor.u32 %v2929_v8, %v2025_v7  ;;  %1330 = vmatpush.bf16.msra.mxu2 %v2298_v6  ;;  %v2943_v7 = vld [vmem:[#allocation5 + $0xa4] sm:$0xf] }
  0x2e   :  { %v2281_v12 = vld [vmem:[#allocation5 + $0x220] sm:$0xf]  ;;  %v2993_v13 = vld [vmem:[#allocation5 + $0x22c] sm:$0xf0]  ;;  %v2154_v21 = vor.u32 %v2961_v11, %v2153_v9  ;;  %1343 = vmatpush.bf16.msra.mxu3 %v2426_v10  ;;  %v2091_v8 = vld [vmem:[#allocation5 + $0xb0] sm:$0xf0]  ;;  %v3356_v9 = vpack.c.b16 %v296_v58, %v296_v58  ;;  %v2238_v10 = vor.u32 %v2979_v63, %v2235_v0 }
  0x2f   :  { %v2409_v14 = vld [vmem:[#allocation5 + $0x320] sm:$0xf]  ;;  %v3025_v15 = vld [vmem:[#allocation5 + $0x32c] sm:$0xf0]  ;;  %v2282_v22 = vor.u32 %v2993_v13, %v2281_v12  ;;  %1305 = vmatpush.bf16.msra.mxu0 %v2026_v17  ;;  %v2975_v12 = vld [vmem:[#allocation5 + $0x1a4] sm:$0xf] }
  0x30   :  { %v2009_v16 = vld [vmem:[#allocation5] sm:$0xf]  ;;  %v2925_v18 = vld [vmem:[#allocation5 + $0xc] sm:$0xf0]  ;;  %v2410_v26 = vor.u32 %v3025_v15, %v2409_v14  ;;  %1318 = vmatpush.bf16.msra.mxu1 %v2154_v21  ;;  %v2219_v13 = vld [vmem:[#allocation5 + $0x1b0] sm:$0xf0]  ;;  %v2094_v15 = vor.u32 %v2943_v7, %v2091_v8 }
  0x31   :  { %v2137_v19 = vld [vmem:[#allocation5 + $0x100] sm:$0xf]  ;;  %v2957_v20 = vld [vmem:[#allocation5 + $0x10c] sm:$0xf0]  ;;  %v2010_v33 = vor.u32 %v2925_v18, %v2009_v16  ;;  %1331 = vmatpush.bf16.msra.mxu2 %v2282_v22  ;;  %v2075_v21 = vld [vmem:[#allocation5 + $0x90] sm:$0xf0] }
  0x32   :  { %v2265_v23 = vld [vmem:[#allocation5 + $0x200] sm:$0xf]  ;;  %v2989_v24 = vld [vmem:[#allocation5 + $0x20c] sm:$0xf0]  ;;  %v2138_v38 = vor.u32 %v2957_v20, %v2137_v19  ;;  %1344 = vmatpush.bf16.msra.mxu3 %v2410_v26  ;;  %v2939_v20 = vld [vmem:[#allocation5 + $0x84] sm:$0xf] }
  0x33   :  { %v82_v25 = vld [vmem:[#allocation2 + $0x8] sm:$0xff]  ;;  %v2393_v27 = vld [vmem:[#allocation5 + $0x300] sm:$0xf]  ;;  %v2266_v39 = vor.u32 %v2989_v24, %v2265_v23  ;;  %1306 = vmatpush.bf16.msra.mxu0 %v2010_v33  ;;  %v84_v22 = vld [vmem:[#allocation2 + $0x18] sm:$0xf]  ;;  %v2222_v23 = vor.u32 %v2975_v12, %v2219_v13 }
  0x34   :  { %v3021_v28 = vld [vmem:[#allocation5 + $0x30c] sm:$0xf0]  ;;  %v2633_v29 = vld [vmem:[#allocation5 + $0x4e0] sm:$0xf]  ;;  %v297_v36 = vunpack.c.l.b16 %v82_v25  ;;  %v298_v42 = vunpack.c.h.b16 %v82_v25  ;;  %1319 = vmatpush.bf16.msra.mxu1 %v2138_v38  ;;  %v2971_v25 = vld [vmem:[#allocation5 + $0x184] sm:$0xf]  ;;  %v301_v35 = vunpack.c.l.b16 %v84_v22 }
  0x35   :  { %v3081_v30 = vld [vmem:[#allocation5 + $0x4ec] sm:$0xf0]  ;;  %v2761_v31 = vld [vmem:[#allocation5 + $0x5e0] sm:$0xf]  ;;  %v2394_v43 = vor.u32 %v3021_v28, %v2393_v27  ;;  %1332 = vmatpush.bf16.msra.mxu2 %v2266_v39  ;;  %v2203_v26 = vld [vmem:[#allocation5 + $0x190] sm:$0xf0]  ;;  %v2078_v28 = vor.u32 %v2939_v20, %v2075_v21 }
  0x36   :  { %v3113_v32 = vld [vmem:[#allocation5 + $0x5ec] sm:$0xf0]  ;;  %v2777_v40 = vld [vmem:[#allocation5 + $0x600] sm:$0xf]  ;;  %v2634_v44 = vor.u32 %v3081_v30, %v2633_v29  ;;  %v3348_v53 = vpack.c.b16 %v297_v36, %v297_v36  ;;  %v3352_v60 = vpack.c.b16 %v298_v42, %v298_v42  ;;  %1307 = vmatmul.bf16.vlgmr.msra.gmra.mxu0 %v3350_v57  ;;  %v2935_v33 = vld [vmem:[#allocation5 + $0x64] sm:$0xf]  ;;  %v2206_v36 = vor.u32 %v2971_v25, %v2203_v26 }
  0x37   :  { %v3117_v45 = vld [vmem:[#allocation5 + $0x60c] sm:$0xf0]  ;;  %v2762_v48 = vor.u32 %v3113_v32, %v2761_v31  ;;  %v2617_v50 = vld [vmem:[#allocation5 + $0x4c0] sm:$0xf]  ;;  %1345 = vmatpush.bf16.msra.mxu3 %v2394_v43  ;;  %1320 = vmatmul.bf16.vlgmr.msra.gmra.mxu1 %v3356_v9  ;;  %v2967_v38 = vld [vmem:[#allocation5 + $0x164] sm:$0xf]  ;;  %v2062_v41 = vor.u32 %v2935_v33, %v2059_v34 }
  0x38   :  { %v3077_v51 = vld [vmem:[#allocation5 + $0x4cc] sm:$0xf0]  ;;  %v2745_v52 = vld [vmem:[#allocation5 + $0x5c0] sm:$0xf]  ;;  %v2778_v59 = vor.u32 %v3117_v45, %v2777_v40  ;;  %1351 = vmatpush.bf16.msrb.mxu0 %v2634_v44  ;;  %1333 = vmatmul.bf16.vlgmr.msra.gmra.mxu2 %v3348_v53  ;;  %v2187_v39 = vld [vmem:[#allocation5 + $0x170] sm:$0xf0] }
  0x39   :  { %v3109_v54 = vld [vmem:[#allocation5 + $0x5cc] sm:$0xf0]  ;;  %v2618_v62 = vor.u32 %v3077_v51, %v2617_v50  ;;  %1364 = vmatpush.bf16.msrb.mxu1 %v2762_v48  ;;  %v2601_v3 = vld [vmem:[#allocation5 + $0x4a0] sm:$0xf]  ;;  %v2043_v47 = vld [vmem:[#allocation5 + $0x50] sm:$0xf0]  ;;  %v3360_v48 = vpack.c.b16 %v301_v35, %v301_v35 }
  0x3a   :  { %v2746_v1 = vor.u32 %v3109_v54, %v2745_v52  ;;  %v3073_v4 = vld [vmem:[#allocation5 + $0x4ac] sm:$0xf0]  ;;  %v2729_v5 = vld [vmem:[#allocation5 + $0x5a0] sm:$0xf]  ;;  %1384 = vmatpush.bf16.msrb.mxu2 %v2778_v59  ;;  %1346 = vmatmul.bf16.vlgmr.msra.gmra.mxu3 %v3352_v60  ;;  %v2963_v51 = vld [vmem:[#allocation5 + $0x144] sm:$0xf]  ;;  %v2046_v55 = vor.u32 %v2931_v46, %v2043_v47 }
  0x3b   :  { %1390 = vmatpush.bf16.msrb.mxu3 %v2126_v49  ;;  %v3105_v6 = vld [vmem:[#allocation5 + $0x5ac] sm:$0xf0]  ;;  %v2602_v11 = vor.u32 %v3073_v4, %v2601_v3  ;;  %v2585_v16 = vld [vmem:[#allocation5 + $0x480] sm:$0xf]  ;;  %v2190_v49 = vor.u32 %v2967_v38, %v2187_v39  ;;  %v2171_v52 = vld [vmem:[#allocation5 + $0x150] sm:$0xf0] }
  0x3c   :  { %1352 = vmatpush.bf16.msrb.mxu0 %v2618_v62  ;;  %v2730_v14 = vor.u32 %v3105_v6, %v2729_v5  ;;  %v3069_v17 = vld [vmem:[#allocation5 + $0x48c] sm:$0xf0]  ;;  %v2713_v18 = vld [vmem:[#allocation5 + $0x580] sm:$0xf]  ;;  %v2927_v62 = vld [vmem:[#allocation5 + $0x24] sm:$0xf] }
  0x3d   :  { %1365 = vmatpush.bf16.msrb.mxu1 %v2746_v1  ;;  %v3101_v19 = vld [vmem:[#allocation5 + $0x58c] sm:$0xf0]  ;;  %v2586_v24 = vor.u32 %v3069_v17, %v2585_v16  ;;  %v2569_v29 = vld [vmem:[#allocation5 + $0x460] sm:$0xf]  ;;  %v2027_v63 = vld [vmem:[#allocation5 + $0x30] sm:$0xf0]  ;;  %v2174_v1 = vor.u32 %v2963_v51, %v2171_v52 }
  0x3e   :  { %1403 = vmatpush.bf16.msra.mxu2 %v2254_v61  ;;  %v2714_v27 = vor.u32 %v3101_v19, %v2713_v18  ;;  %v3065_v30 = vld [vmem:[#allocation5 + $0x46c] sm:$0xf0]  ;;  %v2697_v31 = vld [vmem:[#allocation5 + $0x560] sm:$0xf]  ;;  %v2959_v0 = vld [vmem:[#allocation5 + $0x124] sm:$0xf]  ;;  %v2030_v7 = vor.u32 %v2927_v62, %v2027_v63 }
  0x3f   :  { %1391 = vmatpush.bf16.msrb.mxu3 %v2110_v2  ;;  %v3097_v32 = vld [vmem:[#allocation5 + $0x56c] sm:$0xf0]  ;;  %v2570_v37 = vor.u32 %v3065_v30, %v2569_v29  ;;  %v2553_v42 = vld [vmem:[#allocation5 + $0x440] sm:$0xf]  ;;  %v2155_v3 = vld [vmem:[#allocation5 + $0x130] sm:$0xf0] }
  0x40   :  { %1353 = vmatpush.bf16.msrb.mxu0 %v2602_v11  ;;  %v2698_v40 = vor.u32 %v3097_v32, %v2697_v31  ;;  %v3061_v43 = vld [vmem:[#allocation5 + $0x44c] sm:$0xf0]  ;;  %v2681_v44 = vld [vmem:[#allocation5 + $0x540] sm:$0xf]  ;;  %v83_v5 = vld [vmem:[#allocation2 + $0x10] sm:$0xff]  ;;  %v2158_v19 = vor.u32 %v2959_v0, %v2155_v3 }
  0x41   :  { %1366 = vmatpush.bf16.msrb.mxu1 %v2730_v14  ;;  %v3093_v45 = vld [vmem:[#allocation5 + $0x54c] sm:$0xf0]  ;;  %v2554_v50 = vor.u32 %v3061_v43, %v2553_v42  ;;  %v2537_v56 = vld [vmem:[#allocation5 + $0x420] sm:$0xf]  ;;  %v2923_v12 = vld [vmem:[#allocation5 + $0x4] sm:$0xf]  ;;  %v299_v18 = vunpack.c.l.b16 %v83_v5 }
  0x42   :  { %1404 = vmatpush.bf16.msra.mxu2 %v2238_v10  ;;  %v2682_v54 = vor.u32 %v3093_v45, %v2681_v44  ;;  %v3057_v58 = vld [vmem:[#allocation5 + $0x42c] sm:$0xf0]  ;;  %v2665_v59 = vld [vmem:[#allocation5 + $0x520] sm:$0xf]  ;;  %v2011_v13 = vld [vmem:[#allocation5 + $0x10] sm:$0xf0] }
  0x43   :  { %1392 = vmatpush.bf16.msrb.mxu3 %v2094_v15  ;;  %v3089_v61 = vld [vmem:[#allocation5 + $0x52c] sm:$0xf0]  ;;  %v2538_v2 = vor.u32 %v3057_v58, %v2537_v56  ;;  %v2521_v4 = vld [vmem:[#allocation5 + $0x400] sm:$0xf]  ;;  %v3015_v14 = vld [vmem:[#allocation5 + $0x2e4] sm:$0xf]  ;;  %v2014_v25 = vor.u32 %v2923_v12, %v2011_v13  ;;  %v3364_v34 = vpack.c.b16 %v299_v18, %v299_v18 }
  0x44   :  { %1354 = vmatpush.bf16.msrb.mxu0 %v2586_v24  ;;  %v2666_v6 = vor.u32 %v3089_v61, %v2665_v59  ;;  %v3053_v8 = vld [vmem:[#allocation5 + $0x40c] sm:$0xf0]  ;;  %v2649_v10 = vld [vmem:[#allocation5 + $0x500] sm:$0xf]  ;;  %v2379_v15 = vld [vmem:[#allocation5 + $0x2f0] sm:$0xf0] }
  0x45   :  { %1367 = vmatpush.bf16.msrb.mxu1 %v2714_v27  ;;  %v3085_v11 = vld [vmem:[#allocation5 + $0x50c] sm:$0xf0]  ;;  %v3047_v16 = vld [vmem:[#allocation5 + $0x3e4] sm:$0xf]  ;;  %v2507_v17 = vld [vmem:[#allocation5 + $0x3f0] sm:$0xf0]  ;;  %v2522_v20 = vor.u32 %v3053_v8, %v2521_v4 }
  0x46   :  { %1405 = vmatpush.bf16.msra.mxu2 %v2222_v23  ;;  %v3079_v21 = vld [vmem:[#allocation5 + $0x4e4] sm:$0xf]  ;;  %v2635_v22 = vld [vmem:[#allocation5 + $0x4f0] sm:$0xf0]  ;;  %v300_v23 = vunpack.c.h.b16 %v83_v5  ;;  %v2650_v24 = vor.u32 %v3085_v11, %v2649_v10  ;;  %v2510_v29 = vor.u32 %v3047_v16, %v2507_v17 }
  0x47   :  { %1393 = vmatpush.bf16.msrb.mxu3 %v2078_v28  ;;  %v2955_v26 = vld [vmem:[#allocation5 + $0x104] sm:$0xf]  ;;  %v2139_v27 = vld [vmem:[#allocation5 + $0x110] sm:$0xf0]  ;;  %v2382_v28 = vor.u32 %v3015_v14, %v2379_v15  ;;  %v2638_v33 = vor.u32 %v3079_v21, %v2635_v22 }
  0x48   :  { %1355 = vmatpush.bf16.msrb.mxu0 %v2570_v37  ;;  %2791 = vmatmul.msk.bf16.vlgmr.msrb.gmra.mxu2 %vm1295_vm0, %v3360_v48  ;;  %v3111_v30 = vld [vmem:[#allocation5 + $0x5e4] sm:$0xf]  ;;  %v2763_v31 = vld [vmem:[#allocation5 + $0x5f0] sm:$0xf0]  ;;  %v2142_v38 = vor.u32 %v2955_v26, %v2139_v27  ;;  %v3366_v39 = vpack.c.b16 %v300_v23, %v300_v23 }
  0x49   :  { %1368 = vmatpush.bf16.msrb.mxu1 %v2698_v40  ;;  %v3011_v32 = vld [vmem:[#allocation5 + $0x2c4] sm:$0xf]  ;;  %v2363_v35 = vld [vmem:[#allocation5 + $0x2d0] sm:$0xf0]  ;;  %v2766_v42 = vor.u32 %v3111_v30, %v2763_v31 }
  0x4a   :  { %1406 = vmatpush.bf16.msra.mxu2 %v2206_v36  ;;  %v3043_v36 = vld [vmem:[#allocation5 + $0x3c4] sm:$0xf]  ;;  %v2491_v37 = vld [vmem:[#allocation5 + $0x3d0] sm:$0xf0]  ;;  %v2366_v43 = vor.u32 %v3011_v32, %v2363_v35 }
  0x4b   :  { %1394 = vmatpush.bf16.msrb.mxu3 %v2062_v41  ;;  %v3075_v40 = vld [vmem:[#allocation5 + $0x4c4] sm:$0xf]  ;;  %v2619_v41 = vld [vmem:[#allocation5 + $0x4d0] sm:$0xf0]  ;;  %v2494_v44 = vor.u32 %v3043_v36, %v2491_v37 }
  0x4c   :  { %1356 = vmatpush.bf16.msrb.mxu0 %v2554_v50  ;;  %v3107_v45 = vld [vmem:[#allocation5 + $0x5c4] sm:$0xf]  ;;  %v2747_v46 = vld [vmem:[#allocation5 + $0x5d0] sm:$0xf0] }
  0x4d   :  { %1369 = vmatpush.bf16.msrb.mxu1 %v2682_v54  ;;  %v3007_v47 = vld [vmem:[#allocation5 + $0x2a4] sm:$0xf]  ;;  %v2347_v50 = vld [vmem:[#allocation5 + $0x2b0] sm:$0xf0]  ;;  %v2750_v56 = vor.u32 %v3107_v45, %v2747_v46 }
  0x4e   :  { %1407 = vmatpush.bf16.msra.mxu2 %v2190_v49  ;;  %v2622_v49 = vor.u32 %v3075_v40, %v2619_v41  ;;  %v3039_v51 = vld [vmem:[#allocation5 + $0x3a4] sm:$0xf]  ;;  %v2475_v52 = vld [vmem:[#allocation5 + $0x3b0] sm:$0xf0]  ;;  %v2350_v58 = vor.u32 %v3007_v47, %v2347_v50 }
  0x4f   :  { %1395 = vmatpush.bf16.msrb.mxu3 %v2046_v55  ;;  %v3071_v54 = vld [vmem:[#allocation5 + $0x4a4] sm:$0xf]  ;;  %v2603_v55 = vld [vmem:[#allocation5 + $0x4b0] sm:$0xf0]  ;;  %v2478_v59 = vor.u32 %v3039_v51, %v2475_v52 }
  0x50   :  { %1357 = vmatpush.bf16.msrb.mxu0 %v2538_v2  ;;  %v3103_v61 = vld [vmem:[#allocation5 + $0x5a4] sm:$0xf]  ;;  %v2731_v62 = vld [vmem:[#allocation5 + $0x5b0] sm:$0xf0]  ;;  %v2606_v0 = vor.u32 %v3071_v54, %v2603_v55 }
  0x51   :  { %1370 = vmatpush.bf16.msrb.mxu1 %v2666_v6  ;;  %v3003_v63 = vld [vmem:[#allocation5 + $0x284] sm:$0xf]  ;;  %v2459_v3 = vld [vmem:[#allocation5 + $0x390] sm:$0xf0]  ;;  %v2734_v6 = vor.u32 %v3103_v61, %v2731_v62  ;;  %v2129_v61 = vld [vmem:[#allocation5 + $0xe8] sm:$0xf] }
  0x52   :  { %1408 = vmatpush.bf16.msra.mxu2 %v2174_v1  ;;  %v2331_v1 = vld [vmem:[#allocation5 + $0x290] sm:$0xf0]  ;;  %v3035_v2 = vld [vmem:[#allocation5 + $0x384] sm:$0xf]  ;;  %v2954_v62 = vld [vmem:[#allocation5 + $0xf4] sm:$0xf0] }
  0x53   :  { %1396 = vmatpush.bf16.msrb.mxu3 %v2030_v7  ;;  %v3067_v4 = vld [vmem:[#allocation5 + $0x484] sm:$0xf]  ;;  %v2587_v5 = vld [vmem:[#allocation5 + $0x490] sm:$0xf0]  ;;  %v2334_v7 = vor.u32 %v3003_v63, %v2331_v1  ;;  %v2462_v8 = vor.u32 %v3035_v2, %v2459_v3  ;;  %v2385_v2 = vld [vmem:[#allocation5 + $0x2e8] sm:$0xf] }
  0x54   :  { %1358 = vmatpush.bf16.msrb.mxu0 %v2522_v20  ;;  %v3099_v10 = vld [vmem:[#allocation5 + $0x584] sm:$0xf]  ;;  %v2715_v11 = vld [vmem:[#allocation5 + $0x590] sm:$0xf0]  ;;  %v2590_v13 = vor.u32 %v3067_v4, %v2587_v5  ;;  %v3018_v3 = vld [vmem:[#allocation5 + $0x2f4] sm:$0xf0] }
  0x55   :  { %1371 = vmatpush.bf16.msrb.mxu1 %v2650_v24  ;;  %v2999_v12 = vld [vmem:[#allocation5 + $0x264] sm:$0xf]  ;;  %v2315_v14 = vld [vmem:[#allocation5 + $0x270] sm:$0xf0] }
  0x56   :  { %1409 = vmatpush.bf16.msra.mxu2 %v2158_v19  ;;  %v3031_v15 = vld [vmem:[#allocation5 + $0x364] sm:$0xf]  ;;  %v2443_v16 = vld [vmem:[#allocation5 + $0x370] sm:$0xf0]  ;;  %v2718_v19 = vor.u32 %v3099_v10, %v2715_v11  ;;  %v2318_v20 = vor.u32 %v2999_v12, %v2315_v14  ;;  %v2130_v10 = vor.u32 %v2954_v62, %v2129_v61  ;;  %v2513_v11 = vld [vmem:[#allocation5 + $0x3e8] sm:$0xf] }
  0x57   :  { %1397 = vmatpush.bf16.msrb.mxu3 %v2014_v25  ;;  %1359 = vmatmul.bf16.vlgmr.msrb.gmra.mxu0 %v3364_v34  ;;  %v3063_v17 = vld [vmem:[#allocation5 + $0x464] sm:$0xf]  ;;  %v2571_v18 = vld [vmem:[#allocation5 + $0x470] sm:$0xf0]  ;;  %v2446_v21 = vor.u32 %v3031_v15, %v2443_v16  ;;  %v3050_v12 = vld [vmem:[#allocation5 + $0x3f4] sm:$0xf0]  ;;  %v2386_v16 = vor.u32 %v3018_v3, %v2385_v2 }
  0x58   :  { %1416 = vmatpush.bf16.msra.mxu0 %v2382_v28  ;;  %1372 = vmatmul.bf16.vlgmr.msrb.gmra.mxu1 %v3366_v39  ;;  %v3095_v22 = vld [vmem:[#allocation5 + $0x564] sm:$0xf]  ;;  %v2699_v23 = vld [vmem:[#allocation5 + $0x570] sm:$0xf0]  ;;  %v2574_v25 = vor.u32 %v3063_v17, %v2571_v18  ;;  %v2257_v14 = vld [vmem:[#allocation5 + $0x1e8] sm:$0xf] }
  0x59   :  { %1429 = vmatpush.bf16.msra.mxu1 %v2510_v29  ;;  %v2995_v24 = vld [vmem:[#allocation5 + $0x244] sm:$0xf]  ;;  %v2299_v26 = vld [vmem:[#allocation5 + $0x250] sm:$0xf0]  ;;  %v2702_v31 = vor.u32 %v3095_v22, %v2699_v23  ;;  %v2986_v15 = vld [vmem:[#allocation5 + $0x1f4] sm:$0xf0] }
  0x5a   :  { %1410 = vmatpush.bf16.msra.mxu2 %v2142_v38  ;;  %1398 = vmatmul.bf16.vlgmr.msrb.gmra.mxu3 %v3350_v57  ;;  %v3027_v27 = vld [vmem:[#allocation5 + $0x344] sm:$0xf]  ;;  %v2427_v28 = vld [vmem:[#allocation5 + $0x350] sm:$0xf0]  ;;  %v2113_v18 = vld [vmem:[#allocation5 + $0xc8] sm:$0xf]  ;;  %v2258_v23 = vor.u32 %v2986_v15, %v2257_v14 }
  0x5b   :  { %1442 = vmatpush.bf16.msra.mxu3 %v2638_v33  ;;  %v3059_v29 = vld [vmem:[#allocation5 + $0x444] sm:$0xf]  ;;  %v2555_v30 = vld [vmem:[#allocation5 + $0x450] sm:$0xf0]  ;;  %v2302_v33 = vor.u32 %v2995_v24, %v2299_v26  ;;  %v2430_v35 = vor.u32 %v3027_v27, %v2427_v28  ;;  %v3014_v22 = vld [vmem:[#allocation5 + $0x2d4] sm:$0xf0] }
  0x5c   :  { %1417 = vmatpush.bf16.msra.mxu0 %v2366_v43  ;;  %v3091_v32 = vld [vmem:[#allocation5 + $0x544] sm:$0xf]  ;;  %v2683_v36 = vld [vmem:[#allocation5 + $0x550] sm:$0xf0]  ;;  %v2558_v40 = vor.u32 %v3059_v29, %v2555_v30  ;;  %v2497_v24 = vld [vmem:[#allocation5 + $0x3c8] sm:$0xf] }
  0x5d   :  { %1430 = vmatpush.bf16.msra.mxu1 %v2494_v44  ;;  %1411 = vmatmul.bf16.vlgmr.msra.gmra.mxu2 %v3356_v9  ;;  %v2991_v37 = vld [vmem:[#allocation5 + $0x224] sm:$0xf]  ;;  %v2283_v38 = vld [vmem:[#allocation5 + $0x230] sm:$0xf0]  ;;  %v2686_v45 = vor.u32 %v3091_v32, %v2683_v36  ;;  %v2241_v27 = vld [vmem:[#allocation5 + $0x1c8] sm:$0xf] }
  0x5e   :  { %1455 = vmatpush.bf16.msrb.mxu2 %v2766_v42  ;;  %v3023_v41 = vld [vmem:[#allocation5 + $0x324] sm:$0xf]  ;;  %v2411_v42 = vld [vmem:[#allocation5 + $0x330] sm:$0xf0]  ;;  %v2982_v28 = vld [vmem:[#allocation5 + $0x1d4] sm:$0xf0] }
  0x5f   :  { %1443 = vmatpush.bf16.msra.mxu3 %v2622_v49  ;;  %v3055_v43 = vld [vmem:[#allocation5 + $0x424] sm:$0xf]  ;;  %v2539_v44 = vld [vmem:[#allocation5 + $0x430] sm:$0xf0]  ;;  %v2286_v49 = vor.u32 %v2991_v37, %v2283_v38  ;;  %v2414_v50 = vor.u32 %v3023_v41, %v2411_v42  ;;  %v2097_v30 = vld [vmem:[#allocation5 + $0xa8] sm:$0xf]  ;;  %v2242_v36 = vor.u32 %v2982_v28, %v2241_v27 }
  0x60   :  { %1418 = vmatpush.bf16.msra.mxu0 %v2350_v58  ;;  %v3087_v46 = vld [vmem:[#allocation5 + $0x524] sm:$0xf]  ;;  %v2667_v47 = vld [vmem:[#allocation5 + $0x530] sm:$0xf0]  ;;  %v2542_v55 = vor.u32 %v3055_v43, %v2539_v44  ;;  %v2481_v37 = vld [vmem:[#allocation5 + $0x3a8] sm:$0xf] }
  0x61   :  { %1431 = vmatpush.bf16.msra.mxu1 %v2478_v59  ;;  %v2987_v51 = vld [vmem:[#allocation5 + $0x204] sm:$0xf]  ;;  %v2267_v52 = vld [vmem:[#allocation5 + $0x210] sm:$0xf0]  ;;  %v3042_v38 = vld [vmem:[#allocation5 + $0x3b4] sm:$0xf0] }
  0x62   :  { %1456 = vmatpush.bf16.msrb.mxu2 %v2750_v56  ;;  %v3019_v54 = vld [vmem:[#allocation5 + $0x304] sm:$0xf]  ;;  %v2395_v56 = vld [vmem:[#allocation5 + $0x310] sm:$0xf0]  ;;  %v2270_v4 = vor.u32 %v2987_v51, %v2267_v52  ;;  %v2225_v41 = vld [vmem:[#allocation5 + $0x1a8] sm:$0xf] }
  0x63   :  { %1444 = vmatpush.bf16.msra.mxu3 %v2606_v0  ;;  %v3051_v58 = vld [vmem:[#allocation5 + $0x404] sm:$0xf]  ;;  %v2523_v59 = vld [vmem:[#allocation5 + $0x410] sm:$0xf0]  ;;  %v2670_v0 = vor.u32 %v3087_v46, %v2667_v47  ;;  %v2398_v5 = vor.u32 %v3019_v54, %v2395_v56  ;;  %v2978_v42 = vld [vmem:[#allocation5 + $0x1b4] sm:$0xf0]  ;;  %v2482_v46 = vor.u32 %v3042_v38, %v2481_v37 }
  0x64   :  { %1419 = vmatpush.bf16.msra.mxu0 %v2334_v7  ;;  %v3115_v63 = vld [vmem:[#allocation5 + $0x604] sm:$0xf]  ;;  %v2779_v1 = vld [vmem:[#allocation5 + $0x610] sm:$0xf0]  ;;  %v2081_v44 = vld [vmem:[#allocation5 + $0x88] sm:$0xf] }
  0x65   :  { %1432 = vmatpush.bf16.msra.mxu1 %v2462_v8  ;;  %v2651_v7 = vld [vmem:[#allocation5 + $0x510] sm:$0xf0]  ;;  %v2526_v8 = vor.u32 %v3051_v58, %v2523_v59  ;;  %v2337_v47 = vld [vmem:[#allocation5 + $0x288] sm:$0xf]  ;;  %v3038_v52 = vld [vmem:[#allocation5 + $0x394] sm:$0xf0] }
  0x66   :  { %1457 = vmatpush.bf16.msrb.mxu2 %v2734_v6  ;;  %v3083_v6 = vld [vmem:[#allocation5 + $0x504] sm:$0xf]  ;;  %v2465_v51 = vld [vmem:[#allocation5 + $0x388] sm:$0xf]  ;;  %v2974_v56 = vld [vmem:[#allocation5 + $0x194] sm:$0xf0] }
  0x67   :  { %1445 = vmatpush.bf16.msra.mxu3 %v2590_v13  ;;  %v2782_v13 = vor.u32 %v3115_v63, %v2779_v1  ;;  %v2654_v17 = vor.u32 %v3083_v6, %v2651_v7  ;;  %v2065_v59 = vld [vmem:[#allocation5 + $0x68] sm:$0xf]  ;;  %v2938_v61 = vld [vmem:[#allocation5 + $0x74] sm:$0xf0]  ;;  %v2466_v62 = vor.u32 %v3038_v52, %v2465_v51  ;;  %v2952_v51 = vld [vmem:[#allocation5 + $0xec] sm:$0xf] }
  0x68   :  { %1420 = vmatpush.bf16.msra.mxu0 %v2318_v20  ;;  %v2514_v20 = vor.u32 %v3050_v12, %v2513_v11  ;;  %v2321_v63 = vld [vmem:[#allocation5 + $0x268] sm:$0xf]  ;;  %v3034_v3 = vld [vmem:[#allocation5 + $0x374] sm:$0xf0]  ;;  %v2131_v52 = vld [vmem:[#allocation5 + $0xf8] sm:$0xf0] }
  0x69   :  { %1433 = vmatpush.bf16.msra.mxu1 %v2446_v21  ;;  %v2369_v21 = vld [vmem:[#allocation5 + $0x2c8] sm:$0xf]  ;;  %v2970_v6 = vld [vmem:[#allocation5 + $0x174] sm:$0xf0] }
  0x6a   :  { %1458 = vmatpush.bf16.msrb.mxu2 %v2718_v19  ;;  %v2950_v19 = vld [vmem:[#allocation5 + $0xd4] sm:$0xf0]  ;;  %v2370_v29 = vor.u32 %v3014_v22, %v2369_v21  ;;  %v2449_v2 = vld [vmem:[#allocation5 + $0x368] sm:$0xf] }
  0x6b   :  { %1446 = vmatpush.bf16.msra.mxu3 %v2574_v25  ;;  %v3046_v25 = vld [vmem:[#allocation5 + $0x3d4] sm:$0xf0]  ;;  %v2114_v26 = vor.u32 %v2950_v19, %v2113_v18  ;;  %v2450_v11 = vor.u32 %v3034_v3, %v2449_v2  ;;  %v2305_v12 = vld [vmem:[#allocation5 + $0x248] sm:$0xf]  ;;  %v2134_v3 = vor.u32 %v2952_v51, %v2131_v52 }
  0x6c   :  { %1421 = vmatpush.bf16.msra.mxu0 %v2302_v33  ;;  %v2498_v32 = vor.u32 %v3046_v25, %v2497_v24  ;;  %v2353_v33 = vld [vmem:[#allocation5 + $0x2a8] sm:$0xf]  ;;  %v2966_v19 = vld [vmem:[#allocation5 + $0x154] sm:$0xf0] }
  0x6d   :  { %1434 = vmatpush.bf16.msra.mxu1 %v2430_v35  ;;  %v3010_v35 = vld [vmem:[#allocation5 + $0x2b4] sm:$0xf0]  ;;  %v2433_v15 = vld [vmem:[#allocation5 + $0x348] sm:$0xf] }
  0x6e   :  { %1459 = vmatpush.bf16.msrb.mxu2 %v2702_v31  ;;  %v2946_v31 = vld [vmem:[#allocation5 + $0xb4] sm:$0xf0]  ;;  %v2354_v43 = vor.u32 %v3010_v35, %v2353_v33  ;;  %v2177_v18 = vld [vmem:[#allocation5 + $0x148] sm:$0xf] }
  0x6f   :  { %1447 = vmatpush.bf16.msra.mxu3 %v2558_v40  ;;  %v2098_v40 = vor.u32 %v2946_v31, %v2097_v30  ;;  %v2033_v21 = vld [vmem:[#allocation5 + $0x28] sm:$0xf]  ;;  %v2930_v22 = vld [vmem:[#allocation5 + $0x34] sm:$0xf0] }
  0x70   :  { %1422 = vmatpush.bf16.msra.mxu0 %v2286_v49  ;;  %v3006_v49 = vld [vmem:[#allocation5 + $0x294] sm:$0xf0]  ;;  %v2289_v24 = vld [vmem:[#allocation5 + $0x228] sm:$0xf] }
  0x71   :  { %1435 = vmatpush.bf16.msra.mxu1 %v2414_v50  ;;  %v2226_v50 = vor.u32 %v2978_v42, %v2225_v41  ;;  %v2338_v58 = vor.u32 %v3006_v49, %v2337_v47  ;;  %v2994_v25 = vld [vmem:[#allocation5 + $0x234] sm:$0xf0]  ;;  %v2417_v27 = vld [vmem:[#allocation5 + $0x328] sm:$0xf] }
  0x72   :  { %1460 = vmatpush.bf16.msrb.mxu2 %v2686_v45  ;;  %v2942_v45 = vld [vmem:[#allocation5 + $0x94] sm:$0xf0]  ;;  %v2161_v30 = vld [vmem:[#allocation5 + $0x128] sm:$0xf]  ;;  %v2290_v33 = vor.u32 %v2994_v25, %v2289_v24 }
  0x73   :  { %1448 = vmatpush.bf16.msra.mxu3 %v2542_v55  ;;  %v2082_v54 = vor.u32 %v2942_v45, %v2081_v44  ;;  %v2209_v55 = vld [vmem:[#allocation5 + $0x188] sm:$0xf]  ;;  %v3026_v28 = vld [vmem:[#allocation5 + $0x334] sm:$0xf0] }
  0x74   :  { %1423 = vmatpush.bf16.msra.mxu0 %v2270_v4  ;;  %v2210_v1 = vor.u32 %v2974_v56, %v2209_v55  ;;  %v2066_v4 = vor.u32 %v2938_v61, %v2065_v59  ;;  %v2962_v31 = vld [vmem:[#allocation5 + $0x134] sm:$0xf0]  ;;  %v2418_v38 = vor.u32 %v3026_v28, %v2417_v27  ;;  %v2273_v41 = vld [vmem:[#allocation5 + $0x208] sm:$0xf]  ;;  %v2227_v27 = vld [vmem:[#allocation5 + $0x1b8] sm:$0xf0] }
  0x75   :  { %1436 = vmatpush.bf16.msra.mxu1 %v2398_v5  ;;  %v2193_v5 = vld [vmem:[#allocation5 + $0x168] sm:$0xf]  ;;  %v2926_v35 = vld [vmem:[#allocation5 + $0x14] sm:$0xf0]  ;;  %v2162_v44 = vor.u32 %v2962_v31, %v2161_v30  ;;  %v2940_v30 = vld [vmem:[#allocation5 + $0x8c] sm:$0xf] }
  0x76   :  { %1461 = vmatpush.bf16.msrb.mxu2 %v2670_v0  ;;  %v3002_v0 = vld [vmem:[#allocation5 + $0x274] sm:$0xf0]  ;;  %v2194_v14 = vor.u32 %v2970_v6, %v2193_v5  ;;  %v2769_v56 = vld [vmem:[#allocation5 + $0x5e8] sm:$0xf]  ;;  %v2948_v5 = vld [vmem:[#allocation5 + $0xcc] sm:$0xf] }
  0x77   :  { %1449 = vmatpush.bf16.msra.mxu3 %v2526_v8  ;;  %1424 = vmatmul.bf16.vlgmr.msra.gmra.mxu0 %v3348_v53  ;;  %v2322_v7 = vor.u32 %v3002_v0, %v2321_v63  ;;  %v2049_v8 = vld [vmem:[#allocation5 + $0x48] sm:$0xf]  ;;  %v3082_v37 = vld [vmem:[#allocation5 + $0x4f4] sm:$0xf0]  ;;  %v2984_v0 = vld [vmem:[#allocation5 + $0x1ec] sm:$0xf] }
  0x78   :  { %1507 = vmatpush.bf16.msrb.mxu0 %v2386_v16  ;;  %1437 = vmatmul.bf16.vlgmr.msra.gmra.mxu1 %v3352_v60  ;;  %v3030_v16 = vld [vmem:[#allocation5 + $0x354] sm:$0xf0]  ;;  %v2625_v59 = vld [vmem:[#allocation5 + $0x4c8] sm:$0xf]  ;;  %v2115_v6 = vld [vmem:[#allocation5 + $0xd8] sm:$0xf0] }
  0x79   :  { %1481 = vmatpush.bf16.msrb.mxu1 %v2130_v10  ;;  %v2934_v10 = vld [vmem:[#allocation5 + $0x54] sm:$0xf0]  ;;  %v2593_v24 = vld [vmem:[#allocation5 + $0x488] sm:$0xf]  ;;  %v2083_v31 = vld [vmem:[#allocation5 + $0x98] sm:$0xf0] }
  0x7a   :  { %1462 = vmatpush.bf16.msrb.mxu2 %v2654_v17  ;;  %1450 = vmatmul.bf16.vlgmr.msra.gmra.mxu3 %v3364_v34  ;;  %v2050_v17 = vor.u32 %v2934_v10, %v2049_v8  ;;  %v2990_v42 = vld [vmem:[#allocation5 + $0x214] sm:$0xf0]  ;;  %v2753_v10 = vld [vmem:[#allocation5 + $0x5c8] sm:$0xf] }
  0x7b   :  { %1475 = vmatpush.bf16.msrb.mxu3 %v2782_v13  ;;  %v2998_v13 = vld [vmem:[#allocation5 + $0x254] sm:$0xf0]  ;;  %v2274_v55 = vor.u32 %v2990_v42, %v2273_v41  ;;  %v2211_v41 = vld [vmem:[#allocation5 + $0x198] sm:$0xf0]  ;;  %v2086_v42 = vor.u32 %v2940_v30, %v2083_v31  ;;  %v2561_v51 = vld [vmem:[#allocation5 + $0x448] sm:$0xf] }
  0x7c   :  { %1508 = vmatpush.bf16.msrb.mxu0 %v2370_v29  ;;  %v2034_v29 = vor.u32 %v2930_v22, %v2033_v21  ;;  %v3022_v45 = vld [vmem:[#allocation5 + $0x314] sm:$0xf0]  ;;  %v2737_v22 = vld [vmem:[#allocation5 + $0x5a8] sm:$0xf]  ;;  %v2515_v30 = vld [vmem:[#allocation5 + $0x3f8] sm:$0xf0] }
  0x7d   :  { %1482 = vmatpush.bf16.msrb.mxu1 %v2114_v26  ;;  %1463 = vmatmul.bf16.vlgmr.msrb.gmra.mxu2 %v3366_v39  ;;  %v2178_v26 = vor.u32 %v2966_v19, %v2177_v18  ;;  %v3118_v47 = vld [vmem:[#allocation5 + $0x614] sm:$0xf0]  ;;  %v2944_v18 = vld [vmem:[#allocation5 + $0xac] sm:$0xf]  ;;  %v2099_v19 = vld [vmem:[#allocation5 + $0xb8] sm:$0xf0] }
  0x7e   :  { %1520 = vmatpush.bf16.msra.mxu2 %v2514_v20  ;;  %v2306_v20 = vor.u32 %v2998_v13, %v2305_v12  ;;  %v2609_v12 = vld [vmem:[#allocation5 + $0x4a8] sm:$0xf]  ;;  %v3074_v13 = vld [vmem:[#allocation5 + $0x4b4] sm:$0xf0]  ;;  %v2102_v28 = vor.u32 %v2944_v18, %v2099_v19  ;;  %v2163_v18 = vld [vmem:[#allocation5 + $0x138] sm:$0xf0] }
  0x7f   :  { %1494 = vmatpush.bf16.msra.mxu3 %v2258_v23  ;;  %v2434_v23 = vor.u32 %v3030_v16, %v2433_v15  ;;  %v2243_v15 = vld [vmem:[#allocation5 + $0x1d8] sm:$0xf0]  ;;  %v2118_v16 = vor.u32 %v2948_v5, %v2115_v6  ;;  %v3070_v25 = vld [vmem:[#allocation5 + $0x494] sm:$0xf0] }
  0x80   :  { %1509 = vmatpush.bf16.msrb.mxu0 %v2354_v43  ;;  %v2401_v43 = vld [vmem:[#allocation5 + $0x308] sm:$0xf]  ;;  %v3062_v52 = vld [vmem:[#allocation5 + $0x454] sm:$0xf0]  ;;  %v2179_v5 = vld [vmem:[#allocation5 + $0x158] sm:$0xf0] }
  0x81   :  { %1483 = vmatpush.bf16.msrb.mxu1 %v2098_v40  ;;  %v2145_v40 = vld [vmem:[#allocation5 + $0x108] sm:$0xf]  ;;  %v2402_v61 = vor.u32 %v3022_v45, %v2401_v43  ;;  %v2067_v45 = vld [vmem:[#allocation5 + $0x78] sm:$0xf0] }
  0x82   :  { %1521 = vmatpush.bf16.msra.mxu2 %v2498_v32  ;;  %v2017_v32 = vld [vmem:[#allocation5 + $0x8] sm:$0xf] }
  0x83   :  { %1495 = vmatpush.bf16.msra.mxu3 %v2242_v36  ;;  %v2641_v36 = vld [vmem:[#allocation5 + $0x4e8] sm:$0xf]  ;;  %v2018_v49 = vor.u32 %v2926_v35, %v2017_v32  ;;  %v2594_v32 = vor.u32 %v3070_v25, %v2593_v24  ;;  %v2924_v24 = vld [vmem:[#allocation5 + $0xc] sm:$0xf]  ;;  %v2019_v25 = vld [vmem:[#allocation5 + $0x18] sm:$0xf0] }
  0x84   :  { %1510 = vmatpush.bf16.msrb.mxu0 %v2338_v58  ;;  %v3114_v58 = vld [vmem:[#allocation5 + $0x5f4] sm:$0xf0]  ;;  %v2721_v35 = vld [vmem:[#allocation5 + $0x588] sm:$0xf] }
  0x85   :  { %1484 = vmatpush.bf16.msrb.mxu1 %v2082_v54  ;;  %v2642_v54 = vor.u32 %v3082_v37, %v2641_v36  ;;  %v3102_v36 = vld [vmem:[#allocation5 + $0x594] sm:$0xf0]  ;;  %v2577_v37 = vld [vmem:[#allocation5 + $0x468] sm:$0xf] }
  0x86   :  { %1522 = vmatpush.bf16.msra.mxu2 %v2482_v46  ;;  %v2785_v46 = vld [vmem:[#allocation5 + $0x608] sm:$0xf]  ;;  %v2722_v43 = vor.u32 %v3102_v36, %v2721_v35  ;;  %v3012_v35 = vld [vmem:[#allocation5 + $0x2cc] sm:$0xf]  ;;  %v2022_v36 = vor.u32 %v2924_v24, %v2019_v25 }
  0x87   :  { %1496 = vmatpush.bf16.msra.mxu3 %v2226_v50  ;;  %v2958_v50 = vld [vmem:[#allocation5 + $0x114] sm:$0xf0]  ;;  %v2786_v63 = vor.u32 %v3118_v47, %v2785_v46  ;;  %v3032_v24 = vld [vmem:[#allocation5 + $0x36c] sm:$0xf] }
  0x88   :  { %1511 = vmatpush.bf16.msrb.mxu0 %v2322_v7  ;;  %v2146_v2 = vor.u32 %v2958_v50, %v2145_v40  ;;  %v2972_v40 = vld [vmem:[#allocation5 + $0x18c] sm:$0xf]  ;;  %v3098_v50 = vld [vmem:[#allocation5 + $0x574] sm:$0xf0] }
  0x89   :  { %1485 = vmatpush.bf16.msrb.mxu1 %v2066_v4  ;;  %v2770_v4 = vor.u32 %v3114_v58, %v2769_v56  ;;  %v2214_v47 = vor.u32 %v2972_v40, %v2211_v41  ;;  %v2147_v40 = vld [vmem:[#allocation5 + $0x118] sm:$0xf0] }
  0x8a   :  { %1523 = vmatpush.bf16.msra.mxu2 %v2466_v62  ;;  %2792 = vmatmul.msk.bf16.vlgmr.msrb.gmra.mxu3 %vm1295_vm0, %v3360_v48  ;;  %v3078_v62 = vld [vmem:[#allocation5 + $0x4d4] sm:$0xf0] }
  0x8b   :  { %1497 = vmatpush.bf16.msra.mxu3 %v2210_v1  ;;  %v2259_v1 = vld [vmem:[#allocation5 + $0x1f8] sm:$0xf0]  ;;  %v2626_v7 = vor.u32 %v3078_v62, %v2625_v59  ;;  %v2932_v59 = vld [vmem:[#allocation5 + $0x4c] sm:$0xf]  ;;  %v2562_v62 = vor.u32 %v3062_v52, %v2561_v51 }
  0x8c   :  { %1512 = vmatpush.bf16.msrb.mxu0 %v2306_v20  ;;  %v2262_v8 = vor.u32 %v2984_v0, %v2259_v1  ;;  %v2610_v20 = vor.u32 %v3074_v13, %v2609_v12  ;;  %v2689_v0 = vld [vmem:[#allocation5 + $0x548] sm:$0xf]  ;;  %v3094_v1 = vld [vmem:[#allocation5 + $0x554] sm:$0xf0]  ;;  %v3076_v51 = vld [vmem:[#allocation5 + $0x4cc] sm:$0xf] }
  0x8d   :  { %1486 = vmatpush.bf16.msrb.mxu1 %v2050_v17  ;;  %v2673_v13 = vld [vmem:[#allocation5 + $0x528] sm:$0xf]  ;;  %v2627_v52 = vld [vmem:[#allocation5 + $0x4d8] sm:$0xf0] }
  0x8e   :  { %1524 = vmatpush.bf16.msra.mxu2 %v2450_v11  ;;  %v3110_v11 = vld [vmem:[#allocation5 + $0x5d4] sm:$0xf0] }
  0x8f   :  { %1498 = vmatpush.bf16.msra.mxu3 %v2194_v14  ;;  %v2980_v14 = vld [vmem:[#allocation5 + $0x1cc] sm:$0xf]  ;;  %v2754_v17 = vor.u32 %v3110_v11, %v2753_v10  ;;  %v2035_v10 = vld [vmem:[#allocation5 + $0x38] sm:$0xf0] }
  0x90   :  { %1513 = vmatpush.bf16.msrb.mxu0 %v2290_v33  ;;  %v2246_v21 = vor.u32 %v2980_v14, %v2243_v15  ;;  %v3090_v14 = vld [vmem:[#allocation5 + $0x534] sm:$0xf0]  ;;  %v2529_v15 = vld [vmem:[#allocation5 + $0x408] sm:$0xf] }
  0x91   :  { %1487 = vmatpush.bf16.msrb.mxu1 %v2034_v29 }
  0x92   :  { %1525 = vmatpush.bf16.msra.mxu2 %v2434_v23  ;;  %v3106_v23 = vld [vmem:[#allocation5 + $0x5b4] sm:$0xf0] }
  0x93   :  { %1499 = vmatpush.bf16.msra.mxu3 %v2178_v26  ;;  %v2976_v26 = vld [vmem:[#allocation5 + $0x1ac] sm:$0xf]  ;;  %v2738_v29 = vor.u32 %v3106_v23, %v2737_v22  ;;  %v2674_v22 = vor.u32 %v3090_v14, %v2673_v13  ;;  %v2657_v23 = vld [vmem:[#allocation5 + $0x508] sm:$0xf]  ;;  %v2467_v14 = vld [vmem:[#allocation5 + $0x398] sm:$0xf0] }
  0x94   :  { %1514 = vmatpush.bf16.msrb.mxu0 %v2274_v55  ;;  %v2230_v33 = vor.u32 %v2976_v26, %v2227_v27  ;;  %v2195_v55 = vld [vmem:[#allocation5 + $0x178] sm:$0xf0] }
  0x95   :  { %1488 = vmatpush.bf16.msrb.mxu1 %v2018_v49  ;;  %v2705_v49 = vld [vmem:[#allocation5 + $0x568] sm:$0xf] }
  0x96   :  { %1526 = vmatpush.bf16.msra.mxu2 %v2418_v38  ;;  %v3066_v38 = vld [vmem:[#allocation5 + $0x474] sm:$0xf0]  ;;  %v2706_v58 = vor.u32 %v3098_v50, %v2705_v49  ;;  %v2499_v50 = vld [vmem:[#allocation5 + $0x3d8] sm:$0xf0] }
  0x97   :  { %1500 = vmatpush.bf16.msra.mxu3 %v2162_v44  ;;  %1515 = vmatmul.bf16.vlgmr.msrb.gmra.mxu0 %v3348_v53  ;;  %v2936_v44 = vld [vmem:[#allocation5 + $0x6c] sm:$0xf]  ;;  %v2578_v46 = vor.u32 %v3066_v38, %v2577_v37  ;;  %v2371_v37 = vld [vmem:[#allocation5 + $0x2d8] sm:$0xf0] }
  0x98   :  { %1566 = vmatpush.bf16.msra.mxu0 %v2786_v63  ;;  %1489 = vmatmul.bf16.vlgmr.msrb.gmra.mxu1 %v3350_v57  ;;  %v2070_v56 = vor.u32 %v2936_v44, %v2067_v45  ;;  %v2956_v38 = vld [vmem:[#allocation5 + $0x10c] sm:$0xf] }
  0x99   :  { %1533 = vmatpush.bf16.msra.mxu1 %v2642_v54  ;;  %v2968_v54 = vld [vmem:[#allocation5 + $0x16c] sm:$0xf]  ;;  %v2150_v49 = vor.u32 %v2956_v38, %v2147_v40 }
  0x9a   :  { %1527 = vmatpush.bf16.msra.mxu2 %v2402_v61  ;;  %v2051_v61 = vld [vmem:[#allocation5 + $0x58] sm:$0xf0]  ;;  %v2198_v63 = vor.u32 %v2968_v54, %v2195_v55  ;;  %v3008_v55 = vld [vmem:[#allocation5 + $0x2ac] sm:$0xf] }
  0x9b   :  { %1501 = vmatpush.bf16.msra.mxu3 %v2146_v2  ;;  %v2545_v2 = vld [vmem:[#allocation5 + $0x428] sm:$0xf]  ;;  %v2054_v6 = vor.u32 %v2932_v59, %v2051_v61  ;;  %v2755_v59 = vld [vmem:[#allocation5 + $0x5d8] sm:$0xf0]  ;;  %v3028_v40 = vld [vmem:[#allocation5 + $0x34c] sm:$0xf] }
  0x9c   :  { %1585 = vmatpush.bf16.msrb.mxu0 %v2262_v8  ;;  %v2928_v8 = vld [vmem:[#allocation5 + $0x2c] sm:$0xf] }
  0x9d   :  { %1534 = vmatpush.bf16.msra.mxu1 %v2626_v7  ;;  %1528 = vmatmul.bf16.vlgmr.msra.gmra.mxu2 %v3352_v60  ;;  %v2690_v7 = vor.u32 %v3094_v1, %v2689_v0  ;;  %v2038_v19 = vor.u32 %v2928_v8, %v2035_v10  ;;  %v2483_v1 = vld [vmem:[#allocation5 + $0x3b8] sm:$0xf0] }
  0x9e   :  { %1572 = vmatpush.bf16.msrb.mxu2 %v2134_v3  ;;  %1502 = vmatmul.bf16.vlgmr.msra.gmra.mxu3 %v3356_v9  ;;  %v3058_v3 = vld [vmem:[#allocation5 + $0x434] sm:$0xf0]  ;;  %v2739_v8 = vld [vmem:[#allocation5 + $0x5b8] sm:$0xf0] }
  0x9f   :  { %1546 = vmatpush.bf16.msrb.mxu3 %v2770_v4  ;;  %v2964_v4 = vld [vmem:[#allocation5 + $0x14c] sm:$0xf]  ;;  %v2546_v11 = vor.u32 %v3058_v3, %v2545_v2  ;;  %v2611_v3 = vld [vmem:[#allocation5 + $0x4b8] sm:$0xf0] }
  0xa0   :  { %1586 = vmatpush.bf16.msrb.mxu0 %v2246_v21  ;;  %v2182_v12 = vor.u32 %v2964_v4, %v2179_v5  ;;  %v2387_v21 = vld [vmem:[#allocation5 + $0x2f8] sm:$0xf0]  ;;  %v3072_v2 = vld [vmem:[#allocation5 + $0x4ac] sm:$0xf] }
  0xa1   :  { %1535 = vmatpush.bf16.msra.mxu1 %v2610_v20  ;;  %v3016_v20 = vld [vmem:[#allocation5 + $0x2ec] sm:$0xf] }
  0xa2   :  { %1573 = vmatpush.bf16.msrb.mxu2 %v2118_v16  ;;  %v3054_v16 = vld [vmem:[#allocation5 + $0x414] sm:$0xf0]  ;;  %v2390_v31 = vor.u32 %v3016_v20, %v2387_v21  ;;  %v3004_v5 = vld [vmem:[#allocation5 + $0x28c] sm:$0xf]  ;;  %v2723_v21 = vld [vmem:[#allocation5 + $0x598] sm:$0xf0] }
  0xa3   :  { %1547 = vmatpush.bf16.msrb.mxu3 %v2754_v17  ;;  %v2960_v17 = vld [vmem:[#allocation5 + $0x12c] sm:$0xf]  ;;  %v2530_v26 = vor.u32 %v3054_v16, %v2529_v15  ;;  %v2595_v16 = vld [vmem:[#allocation5 + $0x498] sm:$0xf0] }
  0xa4   :  { %1587 = vmatpush.bf16.msrb.mxu0 %v2230_v33  ;;  %v2166_v27 = vor.u32 %v2960_v17, %v2163_v18  ;;  %v2643_v33 = vld [vmem:[#allocation5 + $0x4f8] sm:$0xf0]  ;;  %v3068_v15 = vld [vmem:[#allocation5 + $0x48c] sm:$0xf] }
  0xa5   :  { %1536 = vmatpush.bf16.msra.mxu1 %v2594_v32  ;;  %v3080_v32 = vld [vmem:[#allocation5 + $0x4ec] sm:$0xf] }
  0xa6   :  { %1574 = vmatpush.bf16.msrb.mxu2 %v2102_v28  ;;  %v3086_v28 = vld [vmem:[#allocation5 + $0x514] sm:$0xf0]  ;;  %v2646_v45 = vor.u32 %v3080_v32, %v2643_v33  ;;  %v3000_v18 = vld [vmem:[#allocation5 + $0x26c] sm:$0xf]  ;;  %v2707_v33 = vld [vmem:[#allocation5 + $0x578] sm:$0xf0] }
  0xa7   :  { %1548 = vmatpush.bf16.msrb.mxu3 %v2738_v29  ;;  %2793 = vmatmul.msk.bf16.vlgmr.msra.gmra.mxu0 %vm1295_vm0, %v3360_v48  ;;  %v3048_v29 = vld [vmem:[#allocation5 + $0x3ec] sm:$0xf]  ;;  %v2658_v41 = vor.u32 %v3086_v28, %v2657_v23  ;;  %v2598_v23 = vor.u32 %v3068_v15, %v2595_v16  ;;  %v2579_v28 = vld [vmem:[#allocation5 + $0x478] sm:$0xf0] }
  0xa8   :  { %1588 = vmatpush.bf16.msrb.mxu0 %v2214_v47  ;;  %v2518_v44 = vor.u32 %v3048_v29, %v2515_v30  ;;  %v2374_v47 = vor.u32 %v3012_v35, %v2371_v37  ;;  %v2996_v30 = vld [vmem:[#allocation5 + $0x24c] sm:$0xf]  ;;  %v3392_v35 = vld [vmem:[#allocation7] sm:$0xf] }
  0xa9   :  { %1537 = vmatpush.bf16.msra.mxu1 %v2578_v46  ;;  %v3044_v46 = vld [vmem:[#allocation5 + $0x3cc] sm:$0xf] }
  0xaa   :  { %1575 = vmatpush.bf16.msrb.mxu2 %v2086_v42  ;;  %v3112_v42 = vld [vmem:[#allocation5 + $0x5ec] sm:$0xf]  ;;  %v2502_v61 = vor.u32 %v3044_v46, %v2499_v50 }
  0xab   :  { %1549 = vmatpush.bf16.msrb.mxu3 %v2722_v43  ;;  %v2771_v43 = vld [vmem:[#allocation5 + $0x5f8] sm:$0xf0]  ;;  %v3096_v32 = vld [vmem:[#allocation5 + $0x56c] sm:$0xf] }
  0xac   :  { %1589 = vmatpush.bf16.msrb.mxu0 %v2198_v63  ;;  %v2774_v54 = vor.u32 %v3112_v42, %v2771_v43  ;;  %v3040_v63 = vld [vmem:[#allocation5 + $0x3ac] sm:$0xf]  ;;  %v2435_v43 = vld [vmem:[#allocation5 + $0x358] sm:$0xf0]  ;;  %v2710_v46 = vor.u32 %v3096_v32, %v2707_v33 }
  0xad   :  { %1538 = vmatpush.bf16.msra.mxu1 %v2562_v62  ;;  %v2630_v62 = vor.u32 %v3076_v51, %v2627_v52  ;;  %v2486_v10 = vor.u32 %v3040_v63, %v2483_v1  ;;  %v3092_v51 = vld [vmem:[#allocation5 + $0x54c] sm:$0xf]  ;;  %v2691_v52 = vld [vmem:[#allocation5 + $0x558] sm:$0xf0] }
  0xae   :  { %1576 = vmatpush.bf16.msrb.mxu2 %v2070_v56  ;;  %v2355_v56 = vld [vmem:[#allocation5 + $0x2b8] sm:$0xf0]  ;;  %v2988_v1 = vld [vmem:[#allocation5 + $0x20c] sm:$0xf] }
  0xaf   :  { %1550 = vmatpush.bf16.msrb.mxu3 %v2706_v58  ;;  %v3108_v58 = vld [vmem:[#allocation5 + $0x5cc] sm:$0xf]  ;;  %v2358_v0 = vor.u32 %v3008_v55, %v2355_v56  ;;  %v2438_v55 = vor.u32 %v3028_v40, %v2435_v43  ;;  %v2547_v63 = vld [vmem:[#allocation5 + $0x438] sm:$0xf0]  ;;  %v3133_v40 = vld [vmem:[#allocation8 + $0x70] sm:$0xff] }
  0xb0   :  { %1590 = vmatpush.bf16.msrb.mxu0 %v2182_v12  ;;  %v2758_v4 = vor.u32 %v3108_v58, %v2755_v59  ;;  %v3036_v12 = vld [vmem:[#allocation5 + $0x38c] sm:$0xf]  ;;  %v3134_v33 = vld [vmem:[#allocation8 + $0x78] sm:$0xff] }
  0xb1   :  { %1539 = vmatpush.bf16.msra.mxu1 %v2546_v11  ;;  %v2614_v11 = vor.u32 %v3072_v2, %v2611_v3  ;;  %v3024_v58 = vld [vmem:[#allocation5 + $0x32c] sm:$0xf]  ;;  %v2275_v2 = vld [vmem:[#allocation5 + $0x218] sm:$0xf0] }
  0xb2   :  { %1577 = vmatpush.bf16.msrb.mxu2 %v2054_v6  ;;  %v2339_v6 = vld [vmem:[#allocation5 + $0x298] sm:$0xf0]  ;;  %v3088_v3 = vld [vmem:[#allocation5 + $0x52c] sm:$0xf] }
  0xb3   :  { %1551 = vmatpush.bf16.msrb.mxu3 %v2690_v7  ;;  %v3104_v7 = vld [vmem:[#allocation5 + $0x5ac] sm:$0xf]  ;;  %v2342_v13 = vor.u32 %v3004_v5, %v2339_v6  ;;  %v3388_v20 = vpop.f32.mrf.mxu0  ;;  %v2675_v5 = vld [vmem:[#allocation5 + $0x538] sm:$0xf0] }
  0xb4   :  { %1591 = vmatpush.bf16.msrb.mxu0 %v2166_v27  ;;  %v2742_v17 = vor.u32 %v3104_v7, %v2739_v8  ;;  %v3064_v27 = vld [vmem:[#allocation5 + $0x46c] sm:$0xf]  ;;  %v3390_v29 = vpop.f32.mrf.mxu1  ;;  %v2787_v7 = vld [vmem:[#allocation5 + $0x618] sm:$0xf0]  ;;  %v2678_v16 = vor.u32 %v3088_v3, %v2675_v5 }
  0xb5   :  { %1540 = vmatpush.bf16.msra.mxu1 %v2530_v26  ;;  %v2451_v26 = vld [vmem:[#allocation5 + $0x378] sm:$0xf0]  ;;  %v2582_v38 = vor.u32 %v3064_v27, %v2579_v28  ;;  %v3116_v6 = vld [vmem:[#allocation5 + $0x60c] sm:$0xf] }
  0xb6   :  { %1578 = vmatpush.bf16.msrb.mxu2 %v2038_v19  ;;  %v2323_v19 = vld [vmem:[#allocation5 + $0x278] sm:$0xf0]  ;;  %v2454_v37 = vor.u32 %v3032_v24, %v2451_v26  ;;  %v3132_v43 = vld [vmem:[#allocation8 + $0x68] sm:$0xff] }
  0xb7   :  { %1552 = vmatpush.bf16.msrb.mxu3 %v2674_v22  ;;  %v2470_v22 = vor.u32 %v3036_v12, %v2467_v14  ;;  %v2326_v25 = vor.u32 %v3000_v18, %v2323_v19  ;;  %v2278_v12 = vor.u32 %v2988_v1, %v2275_v2  ;;  %v2403_v14 = vld [vmem:[#allocation5 + $0x318] sm:$0xf0]  ;;  %v2790_v19 = vor.u32 %v3116_v6, %v2787_v7  ;;  %v3141_v7 = vld [vmem:[#allocation8 + $0xb0] sm:$0xff] }
  0xb8   :  { %1541 = vmatmul.bf16.vlgmr.msra.gmra.mxu1 %v3364_v34  ;;  %1592 = vmatpush.bf16.msrb.mxu0 %v2150_v49  ;;  %v2291_v49 = vld [vmem:[#allocation5 + $0x238] sm:$0xf0] }
  0xb9   :  { %1598 = vmatpush.bf16.msrb.mxu1 %v2390_v31  ;;  %v2307_v31 = vld [vmem:[#allocation5 + $0x258] sm:$0xf0] }
  0xba   :  { %1579 = vmatpush.bf16.msrb.mxu2 %v2022_v36  ;;  %v2531_v18 = vld [vmem:[#allocation5 + $0x418] sm:$0xf0] }
  0xbb   :  { %1553 = vmatpush.bf16.msrb.mxu3 %v2658_v41  ;;  %1593 = vmatmul.bf16.vlgmr.msrb.gmra.mxu0 %v3356_v9  ;;  %v3394_v36 = vpop.f32.mrf.mxu2  ;;  %v2310_v41 = vor.u32 %v2996_v30, %v2307_v31  ;;  %v1310_v50 = vpop.f32.mrf.mxu0  ;;  %v3124_v30 = vld [vmem:[#allocation8 + $0x28] sm:$0xff]  ;;  %v3142_v6 = vld [vmem:[#allocation8 + $0xb8] sm:$0xff] }
  0xbc   :  { %1637 = vmatpush.bf16.msra.mxu0 %v2774_v54  ;;  %v283_v54 = vperm.slane %v3392_v35, 0 }
  0xbd   :  { %1599 = vmatpush.bf16.msrb.mxu1 %v2374_v47  ;;  %1580 = vmatmul.bf16.vlgmr.msrb.gmra.mxu2 %v3350_v57  ;;  %v3100_v57 = vld [vmem:[#allocation5 + $0x58c] sm:$0xf]  ;;  %v3396_v42 = vpop.f32.mrf.mxu3 }
  0xbe   :  { %1624 = vmatpush.bf16.msra.mxu2 %v2646_v45  ;;  %1554 = vmatmul.bf16.vlgmr.msrb.gmra.mxu3 %v3366_v39  ;;  %v2726_v9 = vor.u32 %v3100_v57, %v2723_v21  ;;  %v2563_v45 = vld [vmem:[#allocation5 + $0x458] sm:$0xf0]  ;;  %v2992_v47 = vld [vmem:[#allocation5 + $0x22c] sm:$0xf]  ;;  %v1309_v57 = vadd.f32 %v3388_v20, %v283_v54  ;;  %v3125_v20 = vld [vmem:[#allocation8 + $0x30] sm:$0xff] }
  0xbf   :  { %1611 = vmatpush.bf16.msra.mxu3 %v2518_v44  ;;  %v3060_v44 = vld [vmem:[#allocation5 + $0x44c] sm:$0xf]  ;;  %v2294_v59 = vor.u32 %v2992_v47, %v2291_v49  ;;  %v3130_v49 = vld [vmem:[#allocation8 + $0x58] sm:$0xff] }
  0xc0   :  { %1638 = vmatpush.bf16.msra.mxu0 %v2758_v4  ;;  %v2566_v56 = vor.u32 %v3060_v44, %v2563_v45  ;;  %v1323_v4 = vpop.f32.mrf.mxu1  ;;  %v3084_v21 = vld [vmem:[#allocation5 + $0x50c] sm:$0xf]  ;;  %v1322_v27 = vadd.f32 %v3390_v29, %v1309_v57  ;;  %v3121_v44 = vld [vmem:[#allocation8 + $0x10] sm:$0xff] }
  0xc1   :  { %1600 = vmatpush.bf16.msrb.mxu1 %v2358_v0  ;;  %v2694_v0 = vor.u32 %v3092_v51, %v2691_v52  ;;  %v3120_v47 = vld [vmem:[#allocation8 + $0x8] sm:$0xff]  ;;  %v3119_v51 = vld [vmem:[#allocation8] sm:$0xff] }
  0xc2   :  { %1625 = vmatpush.bf16.msra.mxu2 %v2630_v62  ;;  %v3056_v62 = vld [vmem:[#allocation5 + $0x42c] sm:$0xf] }
  0xc3   :  { %1612 = vmatpush.bf16.msra.mxu3 %v2502_v61  ;;  %v2419_v61 = vld [vmem:[#allocation5 + $0x338] sm:$0xf0]  ;;  %v1336_v8 = vpop.f32.mrf.mxu2 }
  0xc4   :  { %1639 = vmatpush.bf16.msra.mxu0 %v2742_v17  ;;  %v3052_v17 = vld [vmem:[#allocation5 + $0x40c] sm:$0xf] }
  0xc5   :  { %1601 = vmatpush.bf16.msrb.mxu1 %v2342_v13  ;;  %v3020_v13 = vld [vmem:[#allocation5 + $0x30c] sm:$0xf]  ;;  %v1349_v15 = vpop.f32.mrf.mxu3  ;;  %v2534_v24 = vor.u32 %v3052_v17, %v2531_v18  ;;  %v3139_v17 = vld [vmem:[#allocation8 + $0xa0] sm:$0xff] }
  0xc6   :  { %1626 = vmatpush.bf16.msra.mxu2 %v2614_v11  ;;  %v2550_v11 = vor.u32 %v3056_v62, %v2547_v63 }
  0xc7   :  { %1613 = vmatpush.bf16.msra.mxu3 %v2486_v10  ;;  %v2422_v10 = vor.u32 %v3024_v58, %v2419_v61  ;;  %v3127_v58 = vld [vmem:[#allocation8 + $0x40] sm:$0xff]  ;;  %v284_v61 = vperm.slane %v3392_v35, 1 }
  0xc8   :  { %1640 = vmatpush.bf16.msra.mxu0 %v2726_v9  ;;  %v1335_v9 = vadd.f32 %v3394_v36, %v1322_v27 }
  0xc9   :  { %1602 = vmatpush.bf16.msrb.mxu1 %v2326_v25  ;;  %v3126_v25 = vld [vmem:[#allocation8 + $0x38] sm:$0xff] }
  0xca   :  { %1627 = vmatpush.bf16.msra.mxu2 %v2598_v23  ;;  %v2406_v23 = vor.u32 %v3020_v13, %v2403_v14  ;;  %v1348_v29 = vadd.f32 %v3396_v42, %v1335_v9  ;;  %v3135_v9 = vld [vmem:[#allocation8 + $0x80] sm:$0xff] }
  0xcb   :  { %1614 = vmatpush.bf16.msra.mxu3 %v2470_v22  ;;  %v2659_v22 = vld [vmem:[#allocation5 + $0x518] sm:$0xf0]  ;;  %v1386_v28 = vpop.f32.mrf.mxu2 }
  0xcc   :  { %1641 = vmatpush.bf16.msra.mxu0 %v2710_v46  ;;  %v2662_v26 = vor.u32 %v3084_v21, %v2659_v22  ;;  %v3131_v46 = vld [vmem:[#allocation8 + $0x60] sm:$0xff]  ;;  %v3138_v21 = vld [vmem:[#allocation8 + $0x98] sm:$0xff] }
  0xcd   :  { %1603 = vmatpush.bf16.msrb.mxu1 %v2310_v41 }
  0xce   :  { %1628 = vmatpush.bf16.msra.mxu2 %v2582_v38  ;;  %v3123_v38 = vld [vmem:[#allocation8 + $0x20] sm:$0xff] }
  0xcf   :  { %1615 = vmatpush.bf16.msra.mxu3 %v2454_v37 }
  0xd0   :  { %1642 = vmatpush.bf16.msra.mxu0 %v2694_v0 }
  0xd1   :  { %1604 = vmatpush.bf16.msrb.mxu1 %v2294_v59 }
  0xd2   :  { %1629 = vmatpush.bf16.msra.mxu2 %v2566_v56  ;;  %v3128_v56 = vld [vmem:[#allocation8 + $0x48] sm:$0xff] }
  0xd3   :  { %1616 = vmatpush.bf16.msra.mxu3 %v2438_v55  ;;  %v1388_v32 = vpop.f32.mrf.mxu2  ;;  %v3129_v55 = vld [vmem:[#allocation8 + $0x50] sm:$0xff] }
  0xd4   :  { %1643 = vmatpush.bf16.msra.mxu0 %v2678_v16  ;;  %v1360_v31 = vpop.f32.mrf.mxu0  ;;  %v3140_v16 = vld [vmem:[#allocation8 + $0xa8] sm:$0xff]  ;;  %v3150_v32 = vld [vmem:[#allocation8 + $0xf8] sm:$0xff] }
  0xd5   :  { %1605 = vmatpush.bf16.msrb.mxu1 %v2278_v12  ;;  %v1361_v37 = vadd.f32 %v1360_v31, %v1348_v29  ;;  %v285_v31 = vperm.slane %v3392_v35, 2 }
  0xd6   :  { %1630 = vmatpush.bf16.msra.mxu2 %v2550_v11 }
  0xd7   :  { %1617 = vmatpush.bf16.msra.mxu3 %v2422_v10 }
  0xd8   :  { %1606 = vmatmul.bf16.vlgmr.msrb.gmra.mxu1 %v3348_v53  ;;  %1644 = vmatpush.bf16.msra.mxu0 %v2662_v26  ;;  %v1373_v53 = vpop.f32.mrf.mxu1 }
  0xd9   :  { %1657 = vmatpush.bf16.msra.mxu1 %v2790_v19  ;;  %v1374_v36 = vadd.f32 %v1373_v53, %v1361_v37 }
  0xda   :  { %1631 = vmatpush.bf16.msra.mxu2 %v2534_v24  ;;  %v3137_v24 = vld [vmem:[#allocation8 + $0x90] sm:$0xff] }
  0xdb   :  { %1618 = vmatpush.bf16.msra.mxu3 %v2406_v23  ;;  %1645 = vmatmul.bf16.vlgmr.msra.gmra.mxu0 %v3366_v39  ;;  %v1387_v42 = vadd.f32 %v1386_v28, %v1374_v36  ;;  %v3148_v36 = vld [vmem:[#allocation8 + $0xe8] sm:$0xff] }
  0xdc   :  { %v1362_v41 = vpop.f32.mrf.mxu0  ;;  %1970 = vmatpush.bf16.msrb.mxu0 %v3150_v32 }
  0xdd   :  { %1632 = vmatmul.bf16.vlgmr.msra.gmra.mxu2 %v3364_v34  ;;  %1944 = vmatpush.bf16.msrb.mxu1 %v3134_v33  ;;  %v1399_v34 = vpop.f32.mrf.mxu3  ;;  %3161 = vtanh.f32 %v1387_v42  ;;  %v3147_v41 = vld [vmem:[#allocation8 + $0xe0] sm:$0xff] }
  0xde   :  { %1619 = vmatmul.bf16.vlgmr.msra.gmra.mxu3 %v3352_v60  ;;  %v3122_v60 = vld [vmem:[#allocation8 + $0x18] sm:$0xff]  ;;  %v1400_v63 = vadd.f32 %v1399_v34, %v284_v61  ;;  %1957 = vmatpush.bf16.msrb.mxu2 %v3142_v6  ;;  %v286_v61 = vperm.slane %v3392_v35, 3 }
  0xdf   :  { %1931 = vmatpush.bf16.msrb.mxu3 %v3126_v25 }
  0xe0   :  { %v1375_v39 = vpop.f32.mrf.mxu1  ;;  %v1412_v45 = vpop.f32.mrf.mxu2 }
  0xe1   :  { %1945 = vmatpush.bf16.msrb.mxu1 %v3133_v40  ;;  %v1413_v3 = vadd.f32 %v1412_v45, %v1400_v63 }
  0xe2   :  { %1958 = vmatpush.bf16.msrb.mxu2 %v3141_v7 }
  0xe3   :  { %1932 = vmatpush.bf16.msrb.mxu3 %v3125_v20  ;;  %v3162_v54 = vpop.eup %3161  ;;  %v3136_v20 = vld [vmem:[#allocation8 + $0x88] sm:$0xff] }
  0xe5   :  { %1946 = vmatpush.bf16.msrb.mxu1 %v3132_v43  ;;  %v1401_v50 = vpop.f32.mrf.mxu3 }
  0xe6   :  { %1959 = vmatpush.bf16.msrb.mxu2 %v3140_v16 }
  0xe7   :  { %1933 = vmatpush.bf16.msrb.mxu3 %v3124_v30 }
  0xe8   :  { %2794 = vmatmul.msk.bf16.vlgmr.msra.gmra.mxu1 %vm1295_vm0, %v3360_v48  ;;  %v1414_v52 = vpop.f32.mrf.mxu2  ;;  %v1667_v48 = vpack.c.bf16 %v3162_v54, %v3162_v54 }
  0xe9   :  { %1947 = vmatpush.bf16.msrb.mxu1 %v3131_v46  ;;  %v3146_v46 = vld [vmem:[#allocation8 + $0xd8] sm:$0xff] }
  0xea   :  { %1960 = vmatpush.bf16.msrb.mxu2 %v3139_v17 }
  0xeb   :  { %1934 = vmatpush.bf16.msrb.mxu3 %v3123_v38  ;;  %v3149_v38 = vld [vmem:[#allocation8 + $0xf0] sm:$0xff] }
  0xec   :  { %1971 = vmatpush.bf16.msrb.mxu0 %v3149_v38 }
  0xed   :  { %1948 = vmatpush.bf16.msrb.mxu1 %v3130_v49 }
  0xee   :  { %1961 = vmatpush.bf16.msrb.mxu2 %v3138_v21 }
  0xef   :  { %1935 = vmatpush.bf16.msrb.mxu3 %v3122_v60 }
  0xf0   :  { %1972 = vmatpush.bf16.msrb.mxu0 %v3148_v36 }
  0xf1   :  { %1949 = vmatpush.bf16.msrb.mxu1 %v3129_v55  ;;  %v3144_v55 = vld [vmem:[#allocation8 + $0xc8] sm:$0xff] }
  0xf2   :  { %1962 = vmatpush.bf16.msrb.mxu2 %v3137_v24 }
  0xf3   :  { %1936 = vmatpush.bf16.msrb.mxu3 %v3121_v44 }
  0xf4   :  { %v1425_v59 = vpop.f32.mrf.mxu0  ;;  %1973 = vmatpush.bf16.msrb.mxu0 %v3147_v41 }
  0xf5   :  { %1950 = vmatpush.bf16.msrb.mxu1 %v3128_v56  ;;  %v1438_v62 = vpop.f32.mrf.mxu1  ;;  %v1426_v5 = vadd.f32 %v1425_v59, %v1413_v3  ;;  %v3143_v59 = vld [vmem:[#allocation8 + $0xc0] sm:$0xff] }
  0xf6   :  { %1963 = vmatpush.bf16.msrb.mxu2 %v3136_v20 }
  0xf7   :  { %1937 = vmatpush.bf16.msrb.mxu3 %v3120_v47  ;;  %v1439_v10 = vadd.f32 %v1438_v62, %v1426_v5 }
  0xf8   :  { %1974 = vmatpush.bf16.msrb.mxu0 %v3146_v46 }
  0xf9   :  { %1951 = vmatpush.bf16.msrb.mxu1 %v3127_v58 }
  0xfa   :  { %1964 = vmatpush.bf16.msrb.mxu2 %v3135_v9 }
  0xfb   :  { %1938 = vmatpush.bf16.msrb.mxu3 %v3119_v51  ;;  %v3145_v51 = vld [vmem:[#allocation8 + $0xd0] sm:$0xff] }
  0xfc   :  { %v1427_v1 = vpop.f32.mrf.mxu0  ;;  %1975 = vmatpush.bf16.msrb.mxu0 %v3145_v51 }
  0xfd   :  { %v1451_v0 = vpop.f32.mrf.mxu3  ;;  %v1440_v4 = vpop.f32.mrf.mxu1 }
  0xfe   :  { %1939 = vmatmul.bf16.vlgmr.msrb.gmra.mxu3 %v1667_v48  ;;  %v1452_v12 = vadd.f32 %v1451_v0, %v1439_v10 }
 0x100   :  { %v1464_v2 = vpop.f32.mrf.mxu2  ;;  %1976 = vmatpush.bf16.msrb.mxu0 %v3144_v55 }
 0x101   :  { %v1465_v13 = vadd.f32 %v1464_v2, %v1452_v12 }
 0x104   :  { %1977 = vmatpush.bf16.msrb.mxu0 %v3143_v59 }
 0x105   :  { %v1453_v8 = vpop.f32.mrf.mxu3 }
 0x108   :  { %v1466_v11 = vpop.f32.mrf.mxu2 }
 0x10d   :  { %v1477_v14 = vpop.f32.mrf.mxu3 }
 0x10e   :  { %v1478_v15 = vadd.f32 %v1477_v14, %v1465_v13 }
 0x110   :  { %3163 = vtanh.f32 %v1478_v15 }
 0x114   :  { %v1516_v19 = vpop.f32.mrf.mxu0 }
 0x115   :  { %v1479_v18 = vpop.f32.mrf.mxu3  ;;  %v1490_v23 = vpop.f32.mrf.mxu1 }
 0x116   :  { %v3164_v57 = vpop.eup %3163  ;;  %v1491_v33 = vadd.f32 %v1490_v23, %v285_v31 }
 0x117   :  { %v1668_v22 = vpack.c.bf16 %v3164_v57, %v3164_v57 }
 0x119   :  { %1952 = vmatmul.bf16.vlgmr.msrb.gmra.mxu1 %v1668_v22 }
 0x11c   :  { %v1518_v26 = vpop.f32.mrf.mxu0 }
 0x11d   :  { %v1492_v28 = vpop.f32.mrf.mxu1 }
 0x120   :  { %v1529_v27 = vpop.f32.mrf.mxu2 }
 0x121   :  { %v1503_v25 = vpop.f32.mrf.mxu3 }
 0x122   :  { %v1504_v40 = vadd.f32 %v1503_v25, %v1491_v33 }
 0x124   :  { %v1568_v29 = vpop.f32.mrf.mxu0  ;;  %v1517_v34 = vadd.f32 %v1516_v19, %v1504_v40  ;;  %v3160_v19 = vld [vmem:[%s3422_s4] ss:$0 sm:$0xff] }
 0x126   :  { %v1530_v43 = vadd.f32 %v1529_v27, %v1517_v34 }
 0x128   :  { %v1531_v53 = vpop.f32.mrf.mxu2 }
 0x129   :  { %v1505_v30 = vpop.f32.mrf.mxu3 }
 0x12c   :  { %v1570_v37 = vpop.f32.mrf.mxu0 }
 0x135   :  { %v1542_v60 = vpop.f32.mrf.mxu1 }
 0x136   :  { %v1543_v42 = vadd.f32 %v1542_v60, %v1530_v43 }
 0x138   :  { %v1594_v39 = vpop.f32.mrf.mxu0 }
 0x13d   :  { %v1544_v44 = vpop.f32.mrf.mxu1 }
 0x140   :  { %v1581_v49 = vpop.f32.mrf.mxu2  ;;  %v1596_v52 = vpop.f32.mrf.mxu0 }
 0x141   :  { %v1555_v45 = vpop.f32.mrf.mxu3  ;;  %v1582_v62 = vadd.f32 %v1581_v49, %v286_v61 }
 0x142   :  { %v1556_v47 = vadd.f32 %v1555_v45, %v1543_v42 }
 0x143   :  { %v1595_v0 = vadd.f32 %v1594_v39, %v1582_v62 }
 0x144   :  { %v1569_v50 = vadd.f32 %v1568_v29, %v1556_v47 }
 0x146   :  { %3165 = vtanh.f32 %v1569_v50 }
 0x148   :  { %v1583_v48 = vpop.f32.mrf.mxu2 }
 0x149   :  { %v1557_v54 = vpop.f32.mrf.mxu3 }
 0x14c   :  { %v3166_v56 = vpop.eup %3165 }
 0x14d   :  { %v1669_v58 = vpack.c.bf16 %v3166_v56, %v3166_v56 }
 0x14f   :  { %1965 = vmatmul.bf16.vlgmr.msrb.gmra.mxu2 %v1669_v58 }
 0x155   :  { %v1607_v63 = vpop.f32.mrf.mxu1 }
 0x156   :  { %v1608_v2 = vadd.f32 %v1607_v63, %v1595_v0 }
 0x158   :  { %v1646_v1 = vpop.f32.mrf.mxu0 }
 0x15d   :  { %v1609_v3 = vpop.f32.mrf.mxu1 }
 0x160   :  { %v1633_v6 = vpop.f32.mrf.mxu2  ;;  %v1648_v8 = vpop.f32.mrf.mxu0 }
 0x161   :  { %v1620_v4 = vpop.f32.mrf.mxu3 }
 0x162   :  { %v1621_v5 = vadd.f32 %v1620_v4, %v1608_v2 }
 0x164   :  { %v1634_v7 = vadd.f32 %v1633_v6, %v1621_v5 }
 0x165   :  { %v1659_v11 = vpop.f32.mrf.mxu1 }
 0x166   :  { %v1647_v10 = vadd.f32 %v1646_v1, %v1634_v7 }
 0x168   :  { %v1660_v12 = vadd.f32 %v1659_v11, %v1647_v10  ;;  %v1635_v14 = vpop.f32.mrf.mxu2 }
 0x169   :  { %v1622_v13 = vpop.f32.mrf.mxu3 }
 0x16a   :  { %3167 = vtanh.f32 %v1660_v12 }
 0x16d   :  { %v1661_v15 = vpop.f32.mrf.mxu1 }
 0x170   :  { %v3168_v16 = vpop.eup %3167 }
 0x171   :  { %v1670_v35 = vpack.c.bf16 %v3168_v16, %v3168_v16 }
 0x173   :  { %1978 = vmatmul.bf16.vlgmr.msrb.gmra.mxu0 %v1670_v35 }
 0x181   :  { %v1940_v17 = vpop.f32.mrf.mxu3 }
 0x182   :  { %v1941_v57 = vadd.f32 %v3160_v19, %v1940_v17 }
 0x189   :  { %v1942_v18 = vpop.f32.mrf.mxu3 }
 0x196   :  { %v1953_v21 = vpop.f32.mrf.mxu1 }
 0x197   :  { %v1954_v22 = vadd.f32 %v1953_v21, %v1941_v57 }
 0x19e   :  { %v1955_v23 = vpop.f32.mrf.mxu1 }
 0x1d2   :  { %v1966_v24 = vpop.f32.mrf.mxu2 }
 0x1d3   :  { %v1967_v26 = vadd.f32 %v1966_v24, %v1954_v22 }
 0x1da   :  { %v1968_v25 = vpop.f32.mrf.mxu2 }
 0x1f0   :  { %v1979_v27 = vpop.f32.mrf.mxu0 }
 0x1f1   :  { %v1980_v28 = vadd.f32 %v1979_v27, %v1967_v26 }
 0x1f3   :  { %vm1983_vm1 = vcmp.gt.f32.partialorder %v1980_v28, 0.0  ;;  %v1984_v20 = vmul.f32 0.2, %v1980_v28 }
 0x1f5   :  { %v1985_v9 = vsel %vm1983_vm1, %v1980_v28, %v1984_v20 }
 0x1f6   :  { %v1986_v30 = vpack.c.bf16 %v1985_v9, %v1985_v9 }
 0x1f8   :  { %1987 = vst [vmem:[#allocation10] sm:$0xf] %v1986_v30  ;;  %v1981_v29 = vpop.f32.mrf.mxu0 }
 0x1f9   :  { %1998 = dma.vmem_to_hbm [thread:$0]  %s1994_s16, 64, %s1996_s19, [#allocation4]  }
 0x1fa   :  { %3295 = dma.done.wait [#allocation4], 64  }
 0x1fb   :  { %3296 = vsyncadd [#allocation4], 4294967232 }
 0x1fc   :  { %2003 = vsyncpa [#allocation3], 1 }
 0x1fd   :  { %2004 = vsyncpa [#allocation6], 1 }
 0x1fe   :  { %2005 = vsyncpa [#allocation9], 1 }
 0x1ff   :  { %2006 = vsyncpa [#allocation4], 1 }

</bundles_post_ra>
